<compile_context>
chip_gen: v6e
topology: v6e:2x2x1
jax: 0.10.0
libtpu: 0.0.40
codegen_flags: <defaults>
</compile_context>

<pallas_src>
import math
from functools import partial

import jax
import jax.numpy as jnp
from jax.experimental import pallas as pl
from jax.experimental.pallas import tpu as pltpu


def _vmem_spec():
    return pl.BlockSpec(memory_space=pltpu.MemorySpace.VMEM)


# ----------------------------- in-kernel helpers -----------------------------

def _layer_norm(x, w, b, eps=1e-5):
    # x: (N, H), w/b: (1, H)
    mu = jnp.mean(x, axis=-1, keepdims=True)
    var = jnp.mean((x - mu) ** 2, axis=-1, keepdims=True)
    return (x - mu) * jax.lax.rsqrt(var + eps) * w + b


def _gelu_exact(x):
    # PyTorch F.gelu default: exact erf-based GELU.
    return 0.5 * x * (1.0 + jax.lax.erf(x * (1.0 / math.sqrt(2.0))))


def _softmax_lastdim(s):
    s = s - jnp.max(s, axis=-1, keepdims=True)
    p = jnp.exp(s)
    return p * pl.reciprocal(jnp.sum(p, axis=-1, keepdims=True), approx=True)


# --------------------------------- fused kernel --------------------------------

def transformer_kernel(x_ref, pe_ref,
                       wqkv_ref, bqkv_ref, wo_ref, bo_ref,
                       ln1w_ref, ln1b_ref, w1_ref, b1_ref, w2_ref, b2_ref,
                       ln2w_ref, ln2b_ref, fcw_ref, fcb_ref,
                       o_ref, *, num_heads, num_layers):
    B, S, H = x_ref.shape
    hd = H // num_heads
    scale = 1.0 / math.sqrt(hd)

    # positional encoding (pe broadcast over batch); dropout == identity (eval)
    x = x_ref[...] + pe_ref[...][None, :, :]            # (B, S, H)
    x2 = x.reshape(B * S, H)                            # row-flattened activations

    for l in range(num_layers):                         # static loop over layers
        # ---------------- self-attention ----------------
        qkv = jnp.dot(x2, wqkv_ref[l],
                      preferred_element_type=jnp.float32) + bqkv_ref[l]   # (B*S, 3H)
        qkv3 = qkv.reshape(B, S, 3 * H)
        wo = wo_ref[l]                                  # (H, H), pre-transposed

        proj = None
        for h in range(num_heads):                      # static loop over heads
            q = qkv3[:, :, h * hd:(h + 1) * hd]                      # (B, S, hd)
            k = qkv3[:, :, H + h * hd:H + (h + 1) * hd]              # (B, S, hd)
            v = qkv3[:, :, 2 * H + h * hd:2 * H + (h + 1) * hd]      # (B, S, hd)
            s = jnp.einsum('bqd,bkd->bqk', q, k,
                           preferred_element_type=jnp.float32) * scale
            p = _softmax_lastdim(s)
            oh = jnp.einsum('bqk,bkd->bqd', p, v,
                            preferred_element_type=jnp.float32)      # (B, S, hd)
            # fold the head-concat into the output projection (no scratch needed)
            contrib = jnp.dot(oh.reshape(B * S, hd),
                              wo[h * hd:(h + 1) * hd, :],
                              preferred_element_type=jnp.float32)    # (B*S, H)
            proj = contrib if proj is None else proj + contrib
        proj = proj + bo_ref[l]

        # residual + LayerNorm1 (post-norm)
        y = _layer_norm(x2 + proj, ln1w_ref[l], ln1b_ref[l])

        # ---------------- feed-forward ----------------
        h1 = _gelu_exact(jnp.dot(y, w1_ref[l],
                                 preferred_element_type=jnp.float32) + b1_ref[l])
        h2 = jnp.dot(h1, w2_ref[l],
                     preferred_element_type=jnp.float32) + b2_ref[l]

        # residual + LayerNorm2
        x2 = _layer_norm(y + h2, ln2w_ref[l], ln2b_ref[l])

    # ---------------- head: mean over seq, then Linear(H, C) ----------------
    m = jnp.mean(x2.reshape(B, S, H), axis=1)            # (B, H)
    o_ref[...] = jnp.dot(m, fcw_ref[...],
                         preferred_element_type=jnp.float32) + fcb_ref[...]


# --------------------------------- wrapper -------------------------------------

def transformer_forward(src, pe, stacked, fc_wT, fc_b, *, num_heads):
    # src: (B, S, H) float32 ; pe: (max_len, H) ; stacked: 12 per-layer-stacked arrays
    B, S, H = src.shape
    C = fc_wT.shape[1]
    num_layers = stacked[0].shape[0]
    kernel = partial(transformer_kernel, num_heads=num_heads, num_layers=num_layers)
    n_in = 2 + len(stacked) + 2
    return pl.pallas_call(
        kernel,
        out_shape=jax.ShapeDtypeStruct((B, C), jnp.float32),
        in_specs=[_vmem_spec()] * n_in,
        out_specs=_vmem_spec(),
    )(src, pe[:S], *stacked, fc_wT, fc_b)


# ------------------------------ parameter setup ---------------------------------

def make_positional_encoding(d_model, max_len=200):
    position = jnp.arange(max_len, dtype=jnp.float32)[:, None]
    div_term = jnp.exp(jnp.arange(0, d_model, 2, dtype=jnp.float32)
                       * (-math.log(10000.0) / d_model))
    pe = jnp.zeros((max_len, d_model), jnp.float32)
    pe = pe.at[:, 0::2].set(jnp.sin(position * div_term))
    pe = pe.at[:, 1::2].set(jnp.cos(position * div_term))
    return pe                                            # (max_len, d_model)


def init_params(key, hidden, num_classes, num_layers):
    H, F = hidden, hidden * 4

    def uniform(k, shape, fan_in):
        bound = 1.0 / math.sqrt(fan_in)
        return jax.random.uniform(k, shape, jnp.float32, -bound, bound)

    per_layer = []
    for _ in range(num_layers):
        key, *ks = jax.random.split(key, 9)
        per_layer.append(dict(
            wqkv=uniform(ks[0], (H, 3 * H), H),          # in_proj_weight.T
            bqkv=uniform(ks[1], (1, 3 * H), H),          # in_proj_bias
            wo=uniform(ks[2], (H, H), H),                # out_proj.weight.T
            bo=uniform(ks[3], (1, H), H),                # out_proj.bias
            ln1w=jnp.ones((1, H), jnp.float32),          # norm1.weight
            ln1b=jnp.zeros((1, H), jnp.float32),         # norm1.bias
            w1=uniform(ks[4], (H, F), H),                # linear1.weight.T
            b1=uniform(ks[5], (1, F), H),                # linear1.bias
            w2=uniform(ks[6], (F, H), F),                # linear2.weight.T
            b2=uniform(ks[7], (1, H), F),                # linear2.bias
            ln2w=jnp.ones((1, H), jnp.float32),          # norm2.weight
            ln2b=jnp.zeros((1, H), jnp.float32),         # norm2.bias
        ))

    names = ["wqkv", "bqkv", "wo", "bo", "ln1w", "ln1b",
             "w1", "b1", "w2", "b2", "ln2w", "ln2b"]
    stacked = tuple(jnp.stack([p[n] for p in per_layer], axis=0) for n in names)

    key, k1, k2 = jax.random.split(key, 3)
    fc_wT = uniform(k1, (H, num_classes), H)             # fc.weight.T
    fc_b = uniform(k2, (1, num_classes), H)              # fc.bias
    return stacked, fc_wT, fc_b


# ----------------------------------- main ----------------------------------------

if __name__ == "__main__":
    batch, seq = 2, 8
    hidden = 32            # input_dim == hidden_size (required by the module)
    num_heads = 4
    num_classes = 5
    num_layers = 2

    key = jax.random.PRNGKey(0)
    key, k_src = jax.random.split(key)
    src = jax.random.normal(k_src, (batch, seq, hidden), jnp.float32)

    pe = make_positional_encoding(hidden, max_len=200)
    stacked, fc_wT, fc_b = init_params(key, hidden, num_classes, num_layers)

    fwd = jax.jit(partial(transformer_forward, num_heads=num_heads))
    out = fwd(src, pe, stacked, fc_wT, fc_b)
    jax.block_until_ready(out)
    assert out.shape == (batch, num_classes)
    print("KERNEL_OK")
</pallas_src>

<mosaic_0001>
module attributes {stable_mosaic.version = 11 : i64} {
  func.func @transformer_kernel(%arg0: memref<2x8x32xf32, #tpu.memory_space<vmem>>, %arg1: memref<8x32xf32, #tpu.memory_space<vmem>>, %arg2: memref<2x32x96xf32, #tpu.memory_space<vmem>>, %arg3: memref<2x1x96xf32, #tpu.memory_space<vmem>>, %arg4: memref<2x32x32xf32, #tpu.memory_space<vmem>>, %arg5: memref<2x1x32xf32, #tpu.memory_space<vmem>>, %arg6: memref<2x1x32xf32, #tpu.memory_space<vmem>>, %arg7: memref<2x1x32xf32, #tpu.memory_space<vmem>>, %arg8: memref<2x32x128xf32, #tpu.memory_space<vmem>>, %arg9: memref<2x1x128xf32, #tpu.memory_space<vmem>>, %arg10: memref<2x128x32xf32, #tpu.memory_space<vmem>>, %arg11: memref<2x1x32xf32, #tpu.memory_space<vmem>>, %arg12: memref<2x1x32xf32, #tpu.memory_space<vmem>>, %arg13: memref<2x1x32xf32, #tpu.memory_space<vmem>>, %arg14: memref<32x5xf32, #tpu.memory_space<vmem>>, %arg15: memref<1x5xf32, #tpu.memory_space<vmem>>, %arg16: memref<2x5xf32, #tpu.memory_space<vmem>>) attributes {dimension_semantics = [], scalar_prefetch = 0 : i64, scratch_operands = 0 : i64, tpu.core_type = #tpu.core_type<tc>} {
    %c0 = arith.constant 0 : index
    %c0_0 = arith.constant 0 : index
    %c0_1 = arith.constant 0 : index
    %0 = vector.load %arg0[%c0, %c0_0, %c0_1] : memref<2x8x32xf32, #tpu.memory_space<vmem>>, vector<2x8x32xf32>
    %c0_2 = arith.constant 0 : index
    %c0_3 = arith.constant 0 : index
    %1 = vector.load %arg1[%c0_2, %c0_3] : memref<8x32xf32, #tpu.memory_space<vmem>>, vector<8x32xf32>
    %2 = vector.shape_cast %1 : vector<8x32xf32> to vector<1x8x32xf32>
    %3 = vector.broadcast %2 : vector<1x8x32xf32> to vector<2x8x32xf32>
    %4 = arith.addf %0, %3 : vector<2x8x32xf32>
    %5 = vector.shape_cast %4 : vector<2x8x32xf32> to vector<16x32xf32>
    %c0_4 = arith.constant 0 : index
    %c0_5 = arith.constant 0 : index
    %c0_6 = arith.constant 0 : index
    %6 = vector.load %arg2[%c0_4, %c0_5, %c0_6] : memref<2x32x96xf32, #tpu.memory_space<vmem>>, vector<1x32x96xf32>
    %7 = vector.shape_cast %6 : vector<1x32x96xf32> to vector<32x96xf32>
    %cst = arith.constant dense<0.000000e+00> : vector<16x96xf32>
    %8 = tpu.matmul %5, %7, %cst {dimension_numbers = #tpu.dot_dimension_numbers<[1], [0], [0], [1], [0, 0, 1, 1], [], []>} : vector<16x32xf32>, vector<32x96xf32>, vector<16x96xf32> -> vector<16x96xf32>
    %c0_7 = arith.constant 0 : index
    %c0_8 = arith.constant 0 : index
    %c0_9 = arith.constant 0 : index
    %9 = vector.load %arg3[%c0_7, %c0_8, %c0_9] : memref<2x1x96xf32, #tpu.memory_space<vmem>>, vector<1x1x96xf32>
    %10 = vector.shape_cast %9 : vector<1x1x96xf32> to vector<1x96xf32>
    %11 = vector.broadcast %10 : vector<1x96xf32> to vector<16x96xf32>
    %12 = arith.addf %8, %11 : vector<16x96xf32>
    %13 = vector.shape_cast %12 : vector<16x96xf32> to vector<2x8x96xf32>
    %c0_10 = arith.constant 0 : index
    %c0_11 = arith.constant 0 : index
    %c0_12 = arith.constant 0 : index
    %14 = vector.load %arg4[%c0_10, %c0_11, %c0_12] : memref<2x32x32xf32, #tpu.memory_space<vmem>>, vector<1x32x32xf32>
    %15 = vector.shape_cast %14 : vector<1x32x32xf32> to vector<32x32xf32>
    %16 = vector.extract_strided_slice %13 {offsets = [0, 0, 0], sizes = [2, 8, 8], strides = [1, 1, 1]} : vector<2x8x96xf32> to vector<2x8x8xf32>
    %17 = vector.extract_strided_slice %13 {offsets = [0, 0, 32], sizes = [2, 8, 8], strides = [1, 1, 1]} : vector<2x8x96xf32> to vector<2x8x8xf32>
    %18 = vector.extract_strided_slice %13 {offsets = [0, 0, 64], sizes = [2, 8, 8], strides = [1, 1, 1]} : vector<2x8x96xf32> to vector<2x8x8xf32>
    "tpu.trace_start"() <{level = 10 : i32, message = "bqd,bkd->bqk"}> : () -> ()
    %cst_13 = arith.constant dense<0.000000e+00> : vector<2x8x8xf32>
    %19 = tpu.matmul %16, %17, %cst_13 {dimension_numbers = #tpu.dot_dimension_numbers<[2], [2], [1], [1], [0, 0, 0, 1, 1, 1], [0], [0]>} : vector<2x8x8xf32>, vector<2x8x8xf32>, vector<2x8x8xf32> -> vector<2x8x8xf32>
    "tpu.trace_stop"() : () -> ()
    %cst_14 = arith.constant 0.353553385 : f32
    %20 = vector.broadcast %cst_14 : f32 to vector<2x8x8xf32>
    %21 = arith.mulf %19, %20 : vector<2x8x8xf32>
    %cst_15 = arith.constant dense<0xFF800000> : vector<2x8xf32>
    %22 = vector.multi_reduction <maximumf>, %21, %cst_15 [2] : vector<2x8x8xf32> to vector<2x8xf32>
    %23 = vector.shape_cast %22 : vector<2x8xf32> to vector<2x8x1xf32>
    %24 = vector.broadcast %23 : vector<2x8x1xf32> to vector<2x8x8xf32>
    %25 = arith.subf %21, %24 : vector<2x8x8xf32>
    %26 = math.exp %25 : vector<2x8x8xf32>
    %cst_16 = arith.constant dense<0.000000e+00> : vector<2x8xf32>
    %27 = vector.multi_reduction <add>, %26, %cst_16 [2] : vector<2x8x8xf32> to vector<2x8xf32>
    %28 = vector.shape_cast %27 : vector<2x8xf32> to vector<2x8x1xf32>
    %29 = tpu.reciprocal %28 {approx = true} : vector<2x8x1xf32> -> vector<2x8x1xf32>
    %30 = vector.broadcast %29 : vector<2x8x1xf32> to vector<2x8x8xf32>
    %31 = arith.mulf %26, %30 : vector<2x8x8xf32>
    "tpu.trace_start"() <{level = 10 : i32, message = "bqk,bkd->bqd"}> : () -> ()
    %cst_17 = arith.constant dense<0.000000e+00> : vector<2x8x8xf32>
    %32 = tpu.matmul %31, %18, %cst_17 {dimension_numbers = #tpu.dot_dimension_numbers<[2], [1], [1], [2], [0, 0, 0, 1, 1, 2], [0], [0]>} : vector<2x8x8xf32>, vector<2x8x8xf32>, vector<2x8x8xf32> -> vector<2x8x8xf32>
    "tpu.trace_stop"() : () -> ()
    %33 = vector.shape_cast %32 : vector<2x8x8xf32> to vector<16x8xf32>
    %34 = vector.extract_strided_slice %15 {offsets = [0, 0], sizes = [8, 32], strides = [1, 1]} : vector<32x32xf32> to vector<8x32xf32>
    %cst_18 = arith.constant dense<0.000000e+00> : vector<16x32xf32>
    %35 = tpu.matmul %33, %34, %cst_18 {dimension_numbers = #tpu.dot_dimension_numbers<[1], [0], [0], [1], [0, 0, 1, 1], [], []>} : vector<16x8xf32>, vector<8x32xf32>, vector<16x32xf32> -> vector<16x32xf32>
    %36 = vector.extract_strided_slice %13 {offsets = [0, 0, 8], sizes = [2, 8, 8], strides = [1, 1, 1]} : vector<2x8x96xf32> to vector<2x8x8xf32>
    %37 = vector.extract_strided_slice %13 {offsets = [0, 0, 40], sizes = [2, 8, 8], strides = [1, 1, 1]} : vector<2x8x96xf32> to vector<2x8x8xf32>
    %38 = vector.extract_strided_slice %13 {offsets = [0, 0, 72], sizes = [2, 8, 8], strides = [1, 1, 1]} : vector<2x8x96xf32> to vector<2x8x8xf32>
    "tpu.trace_start"() <{level = 10 : i32, message = "bqd,bkd->bqk"}> : () -> ()
    %cst_19 = arith.constant dense<0.000000e+00> : vector<2x8x8xf32>
    %39 = tpu.matmul %36, %37, %cst_19 {dimension_numbers = #tpu.dot_dimension_numbers<[2], [2], [1], [1], [0, 0, 0, 1, 1, 1], [0], [0]>} : vector<2x8x8xf32>, vector<2x8x8xf32>, vector<2x8x8xf32> -> vector<2x8x8xf32>
    "tpu.trace_stop"() : () -> ()
    %cst_20 = arith.constant 0.353553385 : f32
    %40 = vector.broadcast %cst_20 : f32 to vector<2x8x8xf32>
    %41 = arith.mulf %39, %40 : vector<2x8x8xf32>
    %cst_21 = arith.constant dense<0xFF800000> : vector<2x8xf32>
    %42 = vector.multi_reduction <maximumf>, %41, %cst_21 [2] : vector<2x8x8xf32> to vector<2x8xf32>
    %43 = vector.shape_cast %42 : vector<2x8xf32> to vector<2x8x1xf32>
    %44 = vector.broadcast %43 : vector<2x8x1xf32> to vector<2x8x8xf32>
    %45 = arith.subf %41, %44 : vector<2x8x8xf32>
    %46 = math.exp %45 : vector<2x8x8xf32>
    %cst_22 = arith.constant dense<0.000000e+00> : vector<2x8xf32>
    %47 = vector.multi_reduction <add>, %46, %cst_22 [2] : vector<2x8x8xf32> to vector<2x8xf32>
    %48 = vector.shape_cast %47 : vector<2x8xf32> to vector<2x8x1xf32>
    %49 = tpu.reciprocal %48 {approx = true} : vector<2x8x1xf32> -> vector<2x8x1xf32>
    %50 = vector.broadcast %49 : vector<2x8x1xf32> to vector<2x8x8xf32>
    %51 = arith.mulf %46, %50 : vector<2x8x8xf32>
    "tpu.trace_start"() <{level = 10 : i32, message = "bqk,bkd->bqd"}> : () -> ()
    %cst_23 = arith.constant dense<0.000000e+00> : vector<2x8x8xf32>
    %52 = tpu.matmul %51, %38, %cst_23 {dimension_numbers = #tpu.dot_dimension_numbers<[2], [1], [1], [2], [0, 0, 0, 1, 1, 2], [0], [0]>} : vector<2x8x8xf32>, vector<2x8x8xf32>, vector<2x8x8xf32> -> vector<2x8x8xf32>
    "tpu.trace_stop"() : () -> ()
    %53 = vector.shape_cast %52 : vector<2x8x8xf32> to vector<16x8xf32>
    %54 = vector.extract_strided_slice %15 {offsets = [8, 0], sizes = [8, 32], strides = [1, 1]} : vector<32x32xf32> to vector<8x32xf32>
    %cst_24 = arith.constant dense<0.000000e+00> : vector<16x32xf32>
    %55 = tpu.matmul %53, %54, %cst_24 {dimension_numbers = #tpu.dot_dimension_numbers<[1], [0], [0], [1], [0, 0, 1, 1], [], []>} : vector<16x8xf32>, vector<8x32xf32>, vector<16x32xf32> -> vector<16x32xf32>
    %56 = arith.addf %35, %55 : vector<16x32xf32>
    %57 = vector.extract_strided_slice %13 {offsets = [0, 0, 16], sizes = [2, 8, 8], strides = [1, 1, 1]} : vector<2x8x96xf32> to vector<2x8x8xf32>
    %58 = vector.extract_strided_slice %13 {offsets = [0, 0, 48], sizes = [2, 8, 8], strides = [1, 1, 1]} : vector<2x8x96xf32> to vector<2x8x8xf32>
    %59 = vector.extract_strided_slice %13 {offsets = [0, 0, 80], sizes = [2, 8, 8], strides = [1, 1, 1]} : vector<2x8x96xf32> to vector<2x8x8xf32>
    "tpu.trace_start"() <{level = 10 : i32, message = "bqd,bkd->bqk"}> : () -> ()
    %cst_25 = arith.constant dense<0.000000e+00> : vector<2x8x8xf32>
    %60 = tpu.matmul %57, %58, %cst_25 {dimension_numbers = #tpu.dot_dimension_numbers<[2], [2], [1], [1], [0, 0, 0, 1, 1, 1], [0], [0]>} : vector<2x8x8xf32>, vector<2x8x8xf32>, vector<2x8x8xf32> -> vector<2x8x8xf32>
    "tpu.trace_stop"() : () -> ()
    %cst_26 = arith.constant 0.353553385 : f32
    %61 = vector.broadcast %cst_26 : f32 to vector<2x8x8xf32>
    %62 = arith.mulf %60, %61 : vector<2x8x8xf32>
    %cst_27 = arith.constant dense<0xFF800000> : vector<2x8xf32>
    %63 = vector.multi_reduction <maximumf>, %62, %cst_27 [2] : vector<2x8x8xf32> to vector<2x8xf32>
    %64 = vector.shape_cast %63 : vector<2x8xf32> to vector<2x8x1xf32>
    %65 = vector.broadcast %64 : vector<2x8x1xf32> to vector<2x8x8xf32>
    %66 = arith.subf %62, %65 : vector<2x8x8xf32>
    %67 = math.exp %66 : vector<2x8x8xf32>
    %cst_28 = arith.constant dense<0.000000e+00> : vector<2x8xf32>
    %68 = vector.multi_reduction <add>, %67, %cst_28 [2] : vector<2x8x8xf32> to vector<2x8xf32>
    %69 = vector.shape_cast %68 : vector<2x8xf32> to vector<2x8x1xf32>
    %70 = tpu.reciprocal %69 {approx = true} : vector<2x8x1xf32> -> vector<2x8x1xf32>
    %71 = vector.broadcast %70 : vector<2x8x1xf32> to vector<2x8x8xf32>
    %72 = arith.mulf %67, %71 : vector<2x8x8xf32>
    "tpu.trace_start"() <{level = 10 : i32, message = "bqk,bkd->bqd"}> : () -> ()
    %cst_29 = arith.constant dense<0.000000e+00> : vector<2x8x8xf32>
    %73 = tpu.matmul %72, %59, %cst_29 {dimension_numbers = #tpu.dot_dimension_numbers<[2], [1], [1], [2], [0, 0, 0, 1, 1, 2], [0], [0]>} : vector<2x8x8xf32>, vector<2x8x8xf32>, vector<2x8x8xf32> -> vector<2x8x8xf32>
    "tpu.trace_stop"() : () -> ()
    %74 = vector.shape_cast %73 : vector<2x8x8xf32> to vector<16x8xf32>
    %75 = vector.extract_strided_slice %15 {offsets = [16, 0], sizes = [8, 32], strides = [1, 1]} : vector<32x32xf32> to vector<8x32xf32>
    %cst_30 = arith.constant dense<0.000000e+00> : vector<16x32xf32>
    %76 = tpu.matmul %74, %75, %cst_30 {dimension_numbers = #tpu.dot_dimension_numbers<[1], [0], [0], [1], [0, 0, 1, 1], [], []>} : vector<16x8xf32>, vector<8x32xf32>, vector<16x32xf32> -> vector<16x32xf32>
    %77 = arith.addf %56, %76 : vector<16x32xf32>
    %78 = vector.extract_strided_slice %13 {offsets = [0, 0, 24], sizes = [2, 8, 8], strides = [1, 1, 1]} : vector<2x8x96xf32> to vector<2x8x8xf32>
    %79 = vector.extract_strided_slice %13 {offsets = [0, 0, 56], sizes = [2, 8, 8], strides = [1, 1, 1]} : vector<2x8x96xf32> to vector<2x8x8xf32>
    %80 = vector.extract_strided_slice %13 {offsets = [0, 0, 88], sizes = [2, 8, 8], strides = [1, 1, 1]} : vector<2x8x96xf32> to vector<2x8x8xf32>
    "tpu.trace_start"() <{level = 10 : i32, message = "bqd,bkd->bqk"}> : () -> ()
    %cst_31 = arith.constant dense<0.000000e+00> : vector<2x8x8xf32>
    %81 = tpu.matmul %78, %79, %cst_31 {dimension_numbers = #tpu.dot_dimension_numbers<[2], [2], [1], [1], [0, 0, 0, 1, 1, 1], [0], [0]>} : vector<2x8x8xf32>, vector<2x8x8xf32>, vector<2x8x8xf32> -> vector<2x8x8xf32>
    "tpu.trace_stop"() : () -> ()
    %cst_32 = arith.constant 0.353553385 : f32
    %82 = vector.broadcast %cst_32 : f32 to vector<2x8x8xf32>
    %83 = arith.mulf %81, %82 : vector<2x8x8xf32>
    %cst_33 = arith.constant dense<0xFF800000> : vector<2x8xf32>
    %84 = vector.multi_reduction <maximumf>, %83, %cst_33 [2] : vector<2x8x8xf32> to vector<2x8xf32>
    %85 = vector.shape_cast %84 : vector<2x8xf32> to vector<2x8x1xf32>
    %86 = vector.broadcast %85 : vector<2x8x1xf32> to vector<2x8x8xf32>
    %87 = arith.subf %83, %86 : vector<2x8x8xf32>
    %88 = math.exp %87 : vector<2x8x8xf32>
    %cst_34 = arith.constant dense<0.000000e+00> : vector<2x8xf32>
    %89 = vector.multi_reduction <add>, %88, %cst_34 [2] : vector<2x8x8xf32> to vector<2x8xf32>
    %90 = vector.shape_cast %89 : vector<2x8xf32> to vector<2x8x1xf32>
    %91 = tpu.reciprocal %90 {approx = true} : vector<2x8x1xf32> -> vector<2x8x1xf32>
    %92 = vector.broadcast %91 : vector<2x8x1xf32> to vector<2x8x8xf32>
    %93 = arith.mulf %88, %92 : vector<2x8x8xf32>
    "tpu.trace_start"() <{level = 10 : i32, message = "bqk,bkd->bqd"}> : () -> ()
    %cst_35 = arith.constant dense<0.000000e+00> : vector<2x8x8xf32>
    %94 = tpu.matmul %93, %80, %cst_35 {dimension_numbers = #tpu.dot_dimension_numbers<[2], [1], [1], [2], [0, 0, 0, 1, 1, 2], [0], [0]>} : vector<2x8x8xf32>, vector<2x8x8xf32>, vector<2x8x8xf32> -> vector<2x8x8xf32>
    "tpu.trace_stop"() : () -> ()
    %95 = vector.shape_cast %94 : vector<2x8x8xf32> to vector<16x8xf32>
    %96 = vector.extract_strided_slice %15 {offsets = [24, 0], sizes = [8, 32], strides = [1, 1]} : vector<32x32xf32> to vector<8x32xf32>
    %cst_36 = arith.constant dense<0.000000e+00> : vector<16x32xf32>
    %97 = tpu.matmul %95, %96, %cst_36 {dimension_numbers = #tpu.dot_dimension_numbers<[1], [0], [0], [1], [0, 0, 1, 1], [], []>} : vector<16x8xf32>, vector<8x32xf32>, vector<16x32xf32> -> vector<16x32xf32>
    %98 = arith.addf %77, %97 : vector<16x32xf32>
    %c0_37 = arith.constant 0 : index
    %c0_38 = arith.constant 0 : index
    %c0_39 = arith.constant 0 : index
    %99 = vector.load %arg5[%c0_37, %c0_38, %c0_39] : memref<2x1x32xf32, #tpu.memory_space<vmem>>, vector<1x1x32xf32>
    %100 = vector.shape_cast %99 : vector<1x1x32xf32> to vector<1x32xf32>
    %101 = vector.broadcast %100 : vector<1x32xf32> to vector<16x32xf32>
    %102 = arith.addf %98, %101 : vector<16x32xf32>
    %103 = arith.addf %5, %102 : vector<16x32xf32>
    %c0_40 = arith.constant 0 : index
    %c0_41 = arith.constant 0 : index
    %c0_42 = arith.constant 0 : index
    %104 = vector.load %arg6[%c0_40, %c0_41, %c0_42] : memref<2x1x32xf32, #tpu.memory_space<vmem>>, vector<1x1x32xf32>
    %105 = vector.shape_cast %104 : vector<1x1x32xf32> to vector<1x32xf32>
    %c0_43 = arith.constant 0 : index
    %c0_44 = arith.constant 0 : index
    %c0_45 = arith.constant 0 : index
    %106 = vector.load %arg7[%c0_43, %c0_44, %c0_45] : memref<2x1x32xf32, #tpu.memory_space<vmem>>, vector<1x1x32xf32>
    %107 = vector.shape_cast %106 : vector<1x1x32xf32> to vector<1x32xf32>
    %cst_46 = arith.constant dense<0.000000e+00> : vector<16xf32>
    %108 = vector.multi_reduction <add>, %103, %cst_46 [1] : vector<16x32xf32> to vector<16xf32>
    %109 = vector.shape_cast %108 : vector<16xf32> to vector<16x1xf32>
    %cst_47 = arith.constant 3.200000e+01 : f32
    %110 = vector.broadcast %cst_47 : f32 to vector<16x1xf32>
    %111 = arith.divf %109, %110 : vector<16x1xf32>
    %112 = vector.broadcast %111 : vector<16x1xf32> to vector<16x32xf32>
    %113 = arith.subf %103, %112 : vector<16x32xf32>
    %114 = arith.mulf %113, %113 : vector<16x32xf32>
    %cst_48 = arith.constant dense<0.000000e+00> : vector<16xf32>
    %115 = vector.multi_reduction <add>, %114, %cst_48 [1] : vector<16x32xf32> to vector<16xf32>
    %116 = vector.shape_cast %115 : vector<16xf32> to vector<16x1xf32>
    %cst_49 = arith.constant 3.200000e+01 : f32
    %117 = vector.broadcast %cst_49 : f32 to vector<16x1xf32>
    %118 = arith.divf %116, %117 : vector<16x1xf32>
    %119 = vector.broadcast %111 : vector<16x1xf32> to vector<16x32xf32>
    %120 = arith.subf %103, %119 : vector<16x32xf32>
    %cst_50 = arith.constant 9.99999974E-6 : f32
    %121 = vector.broadcast %cst_50 : f32 to vector<16x1xf32>
    %122 = arith.addf %118, %121 : vector<16x1xf32>
    %123 = math.rsqrt %122 : vector<16x1xf32>
    %124 = vector.broadcast %123 : vector<16x1xf32> to vector<16x32xf32>
    %125 = arith.mulf %120, %124 : vector<16x32xf32>
    %126 = vector.broadcast %105 : vector<1x32xf32> to vector<16x32xf32>
    %127 = arith.mulf %125, %126 : vector<16x32xf32>
    %128 = vector.broadcast %107 : vector<1x32xf32> to vector<16x32xf32>
    %129 = arith.addf %127, %128 : vector<16x32xf32>
    %c0_51 = arith.constant 0 : index
    %c0_52 = arith.constant 0 : index
    %c0_53 = arith.constant 0 : index
    %130 = vector.load %arg8[%c0_51, %c0_52, %c0_53] : memref<2x32x128xf32, #tpu.memory_space<vmem>>, vector<1x32x128xf32>
    %131 = vector.shape_cast %130 : vector<1x32x128xf32> to vector<32x128xf32>
    %cst_54 = arith.constant dense<0.000000e+00> : vector<16x128xf32>
    %132 = tpu.matmul %129, %131, %cst_54 {dimension_numbers = #tpu.dot_dimension_numbers<[1], [0], [0], [1], [0, 0, 1, 1], [], []>} : vector<16x32xf32>, vector<32x128xf32>, vector<16x128xf32> -> vector<16x128xf32>
    %c0_55 = arith.constant 0 : index
    %c0_56 = arith.constant 0 : index
    %c0_57 = arith.constant 0 : index
    %133 = vector.load %arg9[%c0_55, %c0_56, %c0_57] : memref<2x1x128xf32, #tpu.memory_space<vmem>>, vector<1x1x128xf32>
    %134 = vector.shape_cast %133 : vector<1x1x128xf32> to vector<1x128xf32>
    %135 = vector.broadcast %134 : vector<1x128xf32> to vector<16x128xf32>
    %136 = arith.addf %132, %135 : vector<16x128xf32>
    %cst_58 = arith.constant 5.000000e-01 : f32
    %137 = vector.broadcast %cst_58 : f32 to vector<16x128xf32>
    %138 = arith.mulf %137, %136 : vector<16x128xf32>
    %cst_59 = arith.constant 0.707106769 : f32
    %139 = vector.broadcast %cst_59 : f32 to vector<16x128xf32>
    %140 = arith.mulf %136, %139 : vector<16x128xf32>
    %141 = math.erf %140 : vector<16x128xf32>
    %cst_60 = arith.constant 1.000000e+00 : f32
    %142 = vector.broadcast %cst_60 : f32 to vector<16x128xf32>
    %143 = arith.addf %142, %141 : vector<16x128xf32>
    %144 = arith.mulf %138, %143 : vector<16x128xf32>
    %c0_61 = arith.constant 0 : index
    %c0_62 = arith.constant 0 : index
    %c0_63 = arith.constant 0 : index
    %145 = vector.load %arg10[%c0_61, %c0_62, %c0_63] : memref<2x128x32xf32, #tpu.memory_space<vmem>>, vector<1x128x32xf32>
    %146 = vector.shape_cast %145 : vector<1x128x32xf32> to vector<128x32xf32>
    %cst_64 = arith.constant dense<0.000000e+00> : vector<16x32xf32>
    %147 = tpu.matmul %144, %146, %cst_64 {dimension_numbers = #tpu.dot_dimension_numbers<[1], [0], [0], [1], [0, 0, 1, 1], [], []>} : vector<16x128xf32>, vector<128x32xf32>, vector<16x32xf32> -> vector<16x32xf32>
    %c0_65 = arith.constant 0 : index
    %c0_66 = arith.constant 0 : index
    %c0_67 = arith.constant 0 : index
    %148 = vector.load %arg11[%c0_65, %c0_66, %c0_67] : memref<2x1x32xf32, #tpu.memory_space<vmem>>, vector<1x1x32xf32>
    %149 = vector.shape_cast %148 : vector<1x1x32xf32> to vector<1x32xf32>
    %150 = vector.broadcast %149 : vector<1x32xf32> to vector<16x32xf32>
    %151 = arith.addf %147, %150 : vector<16x32xf32>
    %152 = arith.addf %129, %151 : vector<16x32xf32>
    %c0_68 = arith.constant 0 : index
    %c0_69 = arith.constant 0 : index
    %c0_70 = arith.constant 0 : index
    %153 = vector.load %arg12[%c0_68, %c0_69, %c0_70] : memref<2x1x32xf32, #tpu.memory_space<vmem>>, vector<1x1x32xf32>
    %154 = vector.shape_cast %153 : vector<1x1x32xf32> to vector<1x32xf32>
    %c0_71 = arith.constant 0 : index
    %c0_72 = arith.constant 0 : index
    %c0_73 = arith.constant 0 : index
    %155 = vector.load %arg13[%c0_71, %c0_72, %c0_73] : memref<2x1x32xf32, #tpu.memory_space<vmem>>, vector<1x1x32xf32>
    %156 = vector.shape_cast %155 : vector<1x1x32xf32> to vector<1x32xf32>
    %cst_74 = arith.constant dense<0.000000e+00> : vector<16xf32>
    %157 = vector.multi_reduction <add>, %152, %cst_74 [1] : vector<16x32xf32> to vector<16xf32>
    %158 = vector.shape_cast %157 : vector<16xf32> to vector<16x1xf32>
    %cst_75 = arith.constant 3.200000e+01 : f32
    %159 = vector.broadcast %cst_75 : f32 to vector<16x1xf32>
    %160 = arith.divf %158, %159 : vector<16x1xf32>
    %161 = vector.broadcast %160 : vector<16x1xf32> to vector<16x32xf32>
    %162 = arith.subf %152, %161 : vector<16x32xf32>
    %163 = arith.mulf %162, %162 : vector<16x32xf32>
    %cst_76 = arith.constant dense<0.000000e+00> : vector<16xf32>
    %164 = vector.multi_reduction <add>, %163, %cst_76 [1] : vector<16x32xf32> to vector<16xf32>
    %165 = vector.shape_cast %164 : vector<16xf32> to vector<16x1xf32>
    %cst_77 = arith.constant 3.200000e+01 : f32
    %166 = vector.broadcast %cst_77 : f32 to vector<16x1xf32>
    %167 = arith.divf %165, %166 : vector<16x1xf32>
    %168 = vector.broadcast %160 : vector<16x1xf32> to vector<16x32xf32>
    %169 = arith.subf %152, %168 : vector<16x32xf32>
    %cst_78 = arith.constant 9.99999974E-6 : f32
    %170 = vector.broadcast %cst_78 : f32 to vector<16x1xf32>
    %171 = arith.addf %167, %170 : vector<16x1xf32>
    %172 = math.rsqrt %171 : vector<16x1xf32>
    %173 = vector.broadcast %172 : vector<16x1xf32> to vector<16x32xf32>
    %174 = arith.mulf %169, %173 : vector<16x32xf32>
    %175 = vector.broadcast %154 : vector<1x32xf32> to vector<16x32xf32>
    %176 = arith.mulf %174, %175 : vector<16x32xf32>
    %177 = vector.broadcast %156 : vector<1x32xf32> to vector<16x32xf32>
    %178 = arith.addf %176, %177 : vector<16x32xf32>
    %c1 = arith.constant 1 : index
    %c0_79 = arith.constant 0 : index
    %c0_80 = arith.constant 0 : index
    %179 = vector.load %arg2[%c1, %c0_79, %c0_80] : memref<2x32x96xf32, #tpu.memory_space<vmem>>, vector<1x32x96xf32>
    %180 = vector.shape_cast %179 : vector<1x32x96xf32> to vector<32x96xf32>
    %cst_81 = arith.constant dense<0.000000e+00> : vector<16x96xf32>
    %181 = tpu.matmul %178, %180, %cst_81 {dimension_numbers = #tpu.dot_dimension_numbers<[1], [0], [0], [1], [0, 0, 1, 1], [], []>} : vector<16x32xf32>, vector<32x96xf32>, vector<16x96xf32> -> vector<16x96xf32>
    %c1_82 = arith.constant 1 : index
    %c0_83 = arith.constant 0 : index
    %c0_84 = arith.constant 0 : index
    %182 = vector.load %arg3[%c1_82, %c0_83, %c0_84] : memref<2x1x96xf32, #tpu.memory_space<vmem>>, vector<1x1x96xf32>
    %183 = vector.shape_cast %182 : vector<1x1x96xf32> to vector<1x96xf32>
    %184 = vector.broadcast %183 : vector<1x96xf32> to vector<16x96xf32>
    %185 = arith.addf %181, %184 : vector<16x96xf32>
    %186 = vector.shape_cast %185 : vector<16x96xf32> to vector<2x8x96xf32>
    %c1_85 = arith.constant 1 : index
    %c0_86 = arith.constant 0 : index
    %c0_87 = arith.constant 0 : index
    %187 = vector.load %arg4[%c1_85, %c0_86, %c0_87] : memref<2x32x32xf32, #tpu.memory_space<vmem>>, vector<1x32x32xf32>
    %188 = vector.shape_cast %187 : vector<1x32x32xf32> to vector<32x32xf32>
    %189 = vector.extract_strided_slice %186 {offsets = [0, 0, 0], sizes = [2, 8, 8], strides = [1, 1, 1]} : vector<2x8x96xf32> to vector<2x8x8xf32>
    %190 = vector.extract_strided_slice %186 {offsets = [0, 0, 32], sizes = [2, 8, 8], strides = [1, 1, 1]} : vector<2x8x96xf32> to vector<2x8x8xf32>
    %191 = vector.extract_strided_slice %186 {offsets = [0, 0, 64], sizes = [2, 8, 8], strides = [1, 1, 1]} : vector<2x8x96xf32> to vector<2x8x8xf32>
    "tpu.trace_start"() <{level = 10 : i32, message = "bqd,bkd->bqk"}> : () -> ()
    %cst_88 = arith.constant dense<0.000000e+00> : vector<2x8x8xf32>
    %192 = tpu.matmul %189, %190, %cst_88 {dimension_numbers = #tpu.dot_dimension_numbers<[2], [2], [1], [1], [0, 0, 0, 1, 1, 1], [0], [0]>} : vector<2x8x8xf32>, vector<2x8x8xf32>, vector<2x8x8xf32> -> vector<2x8x8xf32>
    "tpu.trace_stop"() : () -> ()
    %cst_89 = arith.constant 0.353553385 : f32
    %193 = vector.broadcast %cst_89 : f32 to vector<2x8x8xf32>
    %194 = arith.mulf %192, %193 : vector<2x8x8xf32>
    %cst_90 = arith.constant dense<0xFF800000> : vector<2x8xf32>
    %195 = vector.multi_reduction <maximumf>, %194, %cst_90 [2] : vector<2x8x8xf32> to vector<2x8xf32>
    %196 = vector.shape_cast %195 : vector<2x8xf32> to vector<2x8x1xf32>
    %197 = vector.broadcast %196 : vector<2x8x1xf32> to vector<2x8x8xf32>
    %198 = arith.subf %194, %197 : vector<2x8x8xf32>
    %199 = math.exp %198 : vector<2x8x8xf32>
    %cst_91 = arith.constant dense<0.000000e+00> : vector<2x8xf32>
    %200 = vector.multi_reduction <add>, %199, %cst_91 [2] : vector<2x8x8xf32> to vector<2x8xf32>
    %201 = vector.shape_cast %200 : vector<2x8xf32> to vector<2x8x1xf32>
    %202 = tpu.reciprocal %201 {approx = true} : vector<2x8x1xf32> -> vector<2x8x1xf32>
    %203 = vector.broadcast %202 : vector<2x8x1xf32> to vector<2x8x8xf32>
    %204 = arith.mulf %199, %203 : vector<2x8x8xf32>
    "tpu.trace_start"() <{level = 10 : i32, message = "bqk,bkd->bqd"}> : () -> ()
    %cst_92 = arith.constant dense<0.000000e+00> : vector<2x8x8xf32>
    %205 = tpu.matmul %204, %191, %cst_92 {dimension_numbers = #tpu.dot_dimension_numbers<[2], [1], [1], [2], [0, 0, 0, 1, 1, 2], [0], [0]>} : vector<2x8x8xf32>, vector<2x8x8xf32>, vector<2x8x8xf32> -> vector<2x8x8xf32>
    "tpu.trace_stop"() : () -> ()
    %206 = vector.shape_cast %205 : vector<2x8x8xf32> to vector<16x8xf32>
    %207 = vector.extract_strided_slice %188 {offsets = [0, 0], sizes = [8, 32], strides = [1, 1]} : vector<32x32xf32> to vector<8x32xf32>
    %cst_93 = arith.constant dense<0.000000e+00> : vector<16x32xf32>
    %208 = tpu.matmul %206, %207, %cst_93 {dimension_numbers = #tpu.dot_dimension_numbers<[1], [0], [0], [1], [0, 0, 1, 1], [], []>} : vector<16x8xf32>, vector<8x32xf32>, vector<16x32xf32> -> vector<16x32xf32>
    %209 = vector.extract_strided_slice %186 {offsets = [0, 0, 8], sizes = [2, 8, 8], strides = [1, 1, 1]} : vector<2x8x96xf32> to vector<2x8x8xf32>
    %210 = vector.extract_strided_slice %186 {offsets = [0, 0, 40], sizes = [2, 8, 8], strides = [1, 1, 1]} : vector<2x8x96xf32> to vector<2x8x8xf32>
    %211 = vector.extract_strided_slice %186 {offsets = [0, 0, 72], sizes = [2, 8, 8], strides = [1, 1, 1]} : vector<2x8x96xf32> to vector<2x8x8xf32>
    "tpu.trace_start"() <{level = 10 : i32, message = "bqd,bkd->bqk"}> : () -> ()
    %cst_94 = arith.constant dense<0.000000e+00> : vector<2x8x8xf32>
    %212 = tpu.matmul %209, %210, %cst_94 {dimension_numbers = #tpu.dot_dimension_numbers<[2], [2], [1], [1], [0, 0, 0, 1, 1, 1], [0], [0]>} : vector<2x8x8xf32>, vector<2x8x8xf32>, vector<2x8x8xf32> -> vector<2x8x8xf32>
    "tpu.trace_stop"() : () -> ()
    %cst_95 = arith.constant 0.353553385 : f32
    %213 = vector.broadcast %cst_95 : f32 to vector<2x8x8xf32>
    %214 = arith.mulf %212, %213 : vector<2x8x8xf32>
    %cst_96 = arith.constant dense<0xFF800000> : vector<2x8xf32>
    %215 = vector.multi_reduction <maximumf>, %214, %cst_96 [2] : vector<2x8x8xf32> to vector<2x8xf32>
    %216 = vector.shape_cast %215 : vector<2x8xf32> to vector<2x8x1xf32>
    %217 = vector.broadcast %216 : vector<2x8x1xf32> to vector<2x8x8xf32>
    %218 = arith.subf %214, %217 : vector<2x8x8xf32>
    %219 = math.exp %218 : vector<2x8x8xf32>
    %cst_97 = arith.constant dense<0.000000e+00> : vector<2x8xf32>
    %220 = vector.multi_reduction <add>, %219, %cst_97 [2] : vector<2x8x8xf32> to vector<2x8xf32>
    %221 = vector.shape_cast %220 : vector<2x8xf32> to vector<2x8x1xf32>
    %222 = tpu.reciprocal %221 {approx = true} : vector<2x8x1xf32> -> vector<2x8x1xf32>
    %223 = vector.broadcast %222 : vector<2x8x1xf32> to vector<2x8x8xf32>
    %224 = arith.mulf %219, %223 : vector<2x8x8xf32>
    "tpu.trace_start"() <{level = 10 : i32, message = "bqk,bkd->bqd"}> : () -> ()
    %cst_98 = arith.constant dense<0.000000e+00> : vector<2x8x8xf32>
    %225 = tpu.matmul %224, %211, %cst_98 {dimension_numbers = #tpu.dot_dimension_numbers<[2], [1], [1], [2], [0, 0, 0, 1, 1, 2], [0], [0]>} : vector<2x8x8xf32>, vector<2x8x8xf32>, vector<2x8x8xf32> -> vector<2x8x8xf32>
    "tpu.trace_stop"() : () -> ()
    %226 = vector.shape_cast %225 : vector<2x8x8xf32> to vector<16x8xf32>
    %227 = vector.extract_strided_slice %188 {offsets = [8, 0], sizes = [8, 32], strides = [1, 1]} : vector<32x32xf32> to vector<8x32xf32>
    %cst_99 = arith.constant dense<0.000000e+00> : vector<16x32xf32>
    %228 = tpu.matmul %226, %227, %cst_99 {dimension_numbers = #tpu.dot_dimension_numbers<[1], [0], [0], [1], [0, 0, 1, 1], [], []>} : vector<16x8xf32>, vector<8x32xf32>, vector<16x32xf32> -> vector<16x32xf32>
    %229 = arith.addf %208, %228 : vector<16x32xf32>
    %230 = vector.extract_strided_slice %186 {offsets = [0, 0, 16], sizes = [2, 8, 8], strides = [1, 1, 1]} : vector<2x8x96xf32> to vector<2x8x8xf32>
    %231 = vector.extract_strided_slice %186 {offsets = [0, 0, 48], sizes = [2, 8, 8], strides = [1, 1, 1]} : vector<2x8x96xf32> to vector<2x8x8xf32>
    %232 = vector.extract_strided_slice %186 {offsets = [0, 0, 80], sizes = [2, 8, 8], strides = [1, 1, 1]} : vector<2x8x96xf32> to vector<2x8x8xf32>
    "tpu.trace_start"() <{level = 10 : i32, message = "bqd,bkd->bqk"}> : () -> ()
    %cst_100 = arith.constant dense<0.000000e+00> : vector<2x8x8xf32>
    %233 = tpu.matmul %230, %231, %cst_100 {dimension_numbers = #tpu.dot_dimension_numbers<[2], [2], [1], [1], [0, 0, 0, 1, 1, 1], [0], [0]>} : vector<2x8x8xf32>, vector<2x8x8xf32>, vector<2x8x8xf32> -> vector<2x8x8xf32>
    "tpu.trace_stop"() : () -> ()
    %cst_101 = arith.constant 0.353553385 : f32
    %234 = vector.broadcast %cst_101 : f32 to vector<2x8x8xf32>
    %235 = arith.mulf %233, %234 : vector<2x8x8xf32>
    %cst_102 = arith.constant dense<0xFF800000> : vector<2x8xf32>
    %236 = vector.multi_reduction <maximumf>, %235, %cst_102 [2] : vector<2x8x8xf32> to vector<2x8xf32>
    %237 = vector.shape_cast %236 : vector<2x8xf32> to vector<2x8x1xf32>
    %238 = vector.broadcast %237 : vector<2x8x1xf32> to vector<2x8x8xf32>
    %239 = arith.subf %235, %238 : vector<2x8x8xf32>
    %240 = math.exp %239 : vector<2x8x8xf32>
    %cst_103 = arith.constant dense<0.000000e+00> : vector<2x8xf32>
    %241 = vector.multi_reduction <add>, %240, %cst_103 [2] : vector<2x8x8xf32> to vector<2x8xf32>
    %242 = vector.shape_cast %241 : vector<2x8xf32> to vector<2x8x1xf32>
    %243 = tpu.reciprocal %242 {approx = true} : vector<2x8x1xf32> -> vector<2x8x1xf32>
    %244 = vector.broadcast %243 : vector<2x8x1xf32> to vector<2x8x8xf32>
    %245 = arith.mulf %240, %244 : vector<2x8x8xf32>
    "tpu.trace_start"() <{level = 10 : i32, message = "bqk,bkd->bqd"}> : () -> ()
    %cst_104 = arith.constant dense<0.000000e+00> : vector<2x8x8xf32>
    %246 = tpu.matmul %245, %232, %cst_104 {dimension_numbers = #tpu.dot_dimension_numbers<[2], [1], [1], [2], [0, 0, 0, 1, 1, 2], [0], [0]>} : vector<2x8x8xf32>, vector<2x8x8xf32>, vector<2x8x8xf32> -> vector<2x8x8xf32>
    "tpu.trace_stop"() : () -> ()
    %247 = vector.shape_cast %246 : vector<2x8x8xf32> to vector<16x8xf32>
    %248 = vector.extract_strided_slice %188 {offsets = [16, 0], sizes = [8, 32], strides = [1, 1]} : vector<32x32xf32> to vector<8x32xf32>
    %cst_105 = arith.constant dense<0.000000e+00> : vector<16x32xf32>
    %249 = tpu.matmul %247, %248, %cst_105 {dimension_numbers = #tpu.dot_dimension_numbers<[1], [0], [0], [1], [0, 0, 1, 1], [], []>} : vector<16x8xf32>, vector<8x32xf32>, vector<16x32xf32> -> vector<16x32xf32>
    %250 = arith.addf %229, %249 : vector<16x32xf32>
    %251 = vector.extract_strided_slice %186 {offsets = [0, 0, 24], sizes = [2, 8, 8], strides = [1, 1, 1]} : vector<2x8x96xf32> to vector<2x8x8xf32>
    %252 = vector.extract_strided_slice %186 {offsets = [0, 0, 56], sizes = [2, 8, 8], strides = [1, 1, 1]} : vector<2x8x96xf32> to vector<2x8x8xf32>
    %253 = vector.extract_strided_slice %186 {offsets = [0, 0, 88], sizes = [2, 8, 8], strides = [1, 1, 1]} : vector<2x8x96xf32> to vector<2x8x8xf32>
    "tpu.trace_start"() <{level = 10 : i32, message = "bqd,bkd->bqk"}> : () -> ()
    %cst_106 = arith.constant dense<0.000000e+00> : vector<2x8x8xf32>
    %254 = tpu.matmul %251, %252, %cst_106 {dimension_numbers = #tpu.dot_dimension_numbers<[2], [2], [1], [1], [0, 0, 0, 1, 1, 1], [0], [0]>} : vector<2x8x8xf32>, vector<2x8x8xf32>, vector<2x8x8xf32> -> vector<2x8x8xf32>
    "tpu.trace_stop"() : () -> ()
    %cst_107 = arith.constant 0.353553385 : f32
    %255 = vector.broadcast %cst_107 : f32 to vector<2x8x8xf32>
    %256 = arith.mulf %254, %255 : vector<2x8x8xf32>
    %cst_108 = arith.constant dense<0xFF800000> : vector<2x8xf32>
    %257 = vector.multi_reduction <maximumf>, %256, %cst_108 [2] : vector<2x8x8xf32> to vector<2x8xf32>
    %258 = vector.shape_cast %257 : vector<2x8xf32> to vector<2x8x1xf32>
    %259 = vector.broadcast %258 : vector<2x8x1xf32> to vector<2x8x8xf32>
    %260 = arith.subf %256, %259 : vector<2x8x8xf32>
    %261 = math.exp %260 : vector<2x8x8xf32>
    %cst_109 = arith.constant dense<0.000000e+00> : vector<2x8xf32>
    %262 = vector.multi_reduction <add>, %261, %cst_109 [2] : vector<2x8x8xf32> to vector<2x8xf32>
    %263 = vector.shape_cast %262 : vector<2x8xf32> to vector<2x8x1xf32>
    %264 = tpu.reciprocal %263 {approx = true} : vector<2x8x1xf32> -> vector<2x8x1xf32>
    %265 = vector.broadcast %264 : vector<2x8x1xf32> to vector<2x8x8xf32>
    %266 = arith.mulf %261, %265 : vector<2x8x8xf32>
    "tpu.trace_start"() <{level = 10 : i32, message = "bqk,bkd->bqd"}> : () -> ()
    %cst_110 = arith.constant dense<0.000000e+00> : vector<2x8x8xf32>
    %267 = tpu.matmul %266, %253, %cst_110 {dimension_numbers = #tpu.dot_dimension_numbers<[2], [1], [1], [2], [0, 0, 0, 1, 1, 2], [0], [0]>} : vector<2x8x8xf32>, vector<2x8x8xf32>, vector<2x8x8xf32> -> vector<2x8x8xf32>
    "tpu.trace_stop"() : () -> ()
    %268 = vector.shape_cast %267 : vector<2x8x8xf32> to vector<16x8xf32>
    %269 = vector.extract_strided_slice %188 {offsets = [24, 0], sizes = [8, 32], strides = [1, 1]} : vector<32x32xf32> to vector<8x32xf32>
    %cst_111 = arith.constant dense<0.000000e+00> : vector<16x32xf32>
    %270 = tpu.matmul %268, %269, %cst_111 {dimension_numbers = #tpu.dot_dimension_numbers<[1], [0], [0], [1], [0, 0, 1, 1], [], []>} : vector<16x8xf32>, vector<8x32xf32>, vector<16x32xf32> -> vector<16x32xf32>
    %271 = arith.addf %250, %270 : vector<16x32xf32>
    %c1_112 = arith.constant 1 : index
    %c0_113 = arith.constant 0 : index
    %c0_114 = arith.constant 0 : index
    %272 = vector.load %arg5[%c1_112, %c0_113, %c0_114] : memref<2x1x32xf32, #tpu.memory_space<vmem>>, vector<1x1x32xf32>
    %273 = vector.shape_cast %272 : vector<1x1x32xf32> to vector<1x32xf32>
    %274 = vector.broadcast %273 : vector<1x32xf32> to vector<16x32xf32>
    %275 = arith.addf %271, %274 : vector<16x32xf32>
    %276 = arith.addf %178, %275 : vector<16x32xf32>
    %c1_115 = arith.constant 1 : index
    %c0_116 = arith.constant 0 : index
    %c0_117 = arith.constant 0 : index
    %277 = vector.load %arg6[%c1_115, %c0_116, %c0_117] : memref<2x1x32xf32, #tpu.memory_space<vmem>>, vector<1x1x32xf32>
    %278 = vector.shape_cast %277 : vector<1x1x32xf32> to vector<1x32xf32>
    %c1_118 = arith.constant 1 : index
    %c0_119 = arith.constant 0 : index
    %c0_120 = arith.constant 0 : index
    %279 = vector.load %arg7[%c1_118, %c0_119, %c0_120] : memref<2x1x32xf32, #tpu.memory_space<vmem>>, vector<1x1x32xf32>
    %280 = vector.shape_cast %279 : vector<1x1x32xf32> to vector<1x32xf32>
    %cst_121 = arith.constant dense<0.000000e+00> : vector<16xf32>
    %281 = vector.multi_reduction <add>, %276, %cst_121 [1] : vector<16x32xf32> to vector<16xf32>
    %282 = vector.shape_cast %281 : vector<16xf32> to vector<16x1xf32>
    %cst_122 = arith.constant 3.200000e+01 : f32
    %283 = vector.broadcast %cst_122 : f32 to vector<16x1xf32>
    %284 = arith.divf %282, %283 : vector<16x1xf32>
    %285 = vector.broadcast %284 : vector<16x1xf32> to vector<16x32xf32>
    %286 = arith.subf %276, %285 : vector<16x32xf32>
    %287 = arith.mulf %286, %286 : vector<16x32xf32>
    %cst_123 = arith.constant dense<0.000000e+00> : vector<16xf32>
    %288 = vector.multi_reduction <add>, %287, %cst_123 [1] : vector<16x32xf32> to vector<16xf32>
    %289 = vector.shape_cast %288 : vector<16xf32> to vector<16x1xf32>
    %cst_124 = arith.constant 3.200000e+01 : f32
    %290 = vector.broadcast %cst_124 : f32 to vector<16x1xf32>
    %291 = arith.divf %289, %290 : vector<16x1xf32>
    %292 = vector.broadcast %284 : vector<16x1xf32> to vector<16x32xf32>
    %293 = arith.subf %276, %292 : vector<16x32xf32>
    %cst_125 = arith.constant 9.99999974E-6 : f32
    %294 = vector.broadcast %cst_125 : f32 to vector<16x1xf32>
    %295 = arith.addf %291, %294 : vector<16x1xf32>
    %296 = math.rsqrt %295 : vector<16x1xf32>
    %297 = vector.broadcast %296 : vector<16x1xf32> to vector<16x32xf32>
    %298 = arith.mulf %293, %297 : vector<16x32xf32>
    %299 = vector.broadcast %278 : vector<1x32xf32> to vector<16x32xf32>
    %300 = arith.mulf %298, %299 : vector<16x32xf32>
    %301 = vector.broadcast %280 : vector<1x32xf32> to vector<16x32xf32>
    %302 = arith.addf %300, %301 : vector<16x32xf32>
    %c1_126 = arith.constant 1 : index
    %c0_127 = arith.constant 0 : index
    %c0_128 = arith.constant 0 : index
    %303 = vector.load %arg8[%c1_126, %c0_127, %c0_128] : memref<2x32x128xf32, #tpu.memory_space<vmem>>, vector<1x32x128xf32>
    %304 = vector.shape_cast %303 : vector<1x32x128xf32> to vector<32x128xf32>
    %cst_129 = arith.constant dense<0.000000e+00> : vector<16x128xf32>
    %305 = tpu.matmul %302, %304, %cst_129 {dimension_numbers = #tpu.dot_dimension_numbers<[1], [0], [0], [1], [0, 0, 1, 1], [], []>} : vector<16x32xf32>, vector<32x128xf32>, vector<16x128xf32> -> vector<16x128xf32>
    %c1_130 = arith.constant 1 : index
    %c0_131 = arith.constant 0 : index
    %c0_132 = arith.constant 0 : index
    %306 = vector.load %arg9[%c1_130, %c0_131, %c0_132] : memref<2x1x128xf32, #tpu.memory_space<vmem>>, vector<1x1x128xf32>
    %307 = vector.shape_cast %306 : vector<1x1x128xf32> to vector<1x128xf32>
    %308 = vector.broadcast %307 : vector<1x128xf32> to vector<16x128xf32>
    %309 = arith.addf %305, %308 : vector<16x128xf32>
    %cst_133 = arith.constant 5.000000e-01 : f32
    %310 = vector.broadcast %cst_133 : f32 to vector<16x128xf32>
    %311 = arith.mulf %310, %309 : vector<16x128xf32>
    %cst_134 = arith.constant 0.707106769 : f32
    %312 = vector.broadcast %cst_134 : f32 to vector<16x128xf32>
    %313 = arith.mulf %309, %312 : vector<16x128xf32>
    %314 = math.erf %313 : vector<16x128xf32>
    %cst_135 = arith.constant 1.000000e+00 : f32
    %315 = vector.broadcast %cst_135 : f32 to vector<16x128xf32>
    %316 = arith.addf %315, %314 : vector<16x128xf32>
    %317 = arith.mulf %311, %316 : vector<16x128xf32>
    %c1_136 = arith.constant 1 : index
    %c0_137 = arith.constant 0 : index
    %c0_138 = arith.constant 0 : index
    %318 = vector.load %arg10[%c1_136, %c0_137, %c0_138] : memref<2x128x32xf32, #tpu.memory_space<vmem>>, vector<1x128x32xf32>
    %319 = vector.shape_cast %318 : vector<1x128x32xf32> to vector<128x32xf32>
    %cst_139 = arith.constant dense<0.000000e+00> : vector<16x32xf32>
    %320 = tpu.matmul %317, %319, %cst_139 {dimension_numbers = #tpu.dot_dimension_numbers<[1], [0], [0], [1], [0, 0, 1, 1], [], []>} : vector<16x128xf32>, vector<128x32xf32>, vector<16x32xf32> -> vector<16x32xf32>
    %c1_140 = arith.constant 1 : index
    %c0_141 = arith.constant 0 : index
    %c0_142 = arith.constant 0 : index
    %321 = vector.load %arg11[%c1_140, %c0_141, %c0_142] : memref<2x1x32xf32, #tpu.memory_space<vmem>>, vector<1x1x32xf32>
    %322 = vector.shape_cast %321 : vector<1x1x32xf32> to vector<1x32xf32>
    %323 = vector.broadcast %322 : vector<1x32xf32> to vector<16x32xf32>
    %324 = arith.addf %320, %323 : vector<16x32xf32>
    %325 = arith.addf %302, %324 : vector<16x32xf32>
    %c1_143 = arith.constant 1 : index
    %c0_144 = arith.constant 0 : index
    %c0_145 = arith.constant 0 : index
    %326 = vector.load %arg12[%c1_143, %c0_144, %c0_145] : memref<2x1x32xf32, #tpu.memory_space<vmem>>, vector<1x1x32xf32>
    %327 = vector.shape_cast %326 : vector<1x1x32xf32> to vector<1x32xf32>
    %c1_146 = arith.constant 1 : index
    %c0_147 = arith.constant 0 : index
    %c0_148 = arith.constant 0 : index
    %328 = vector.load %arg13[%c1_146, %c0_147, %c0_148] : memref<2x1x32xf32, #tpu.memory_space<vmem>>, vector<1x1x32xf32>
    %329 = vector.shape_cast %328 : vector<1x1x32xf32> to vector<1x32xf32>
    %cst_149 = arith.constant dense<0.000000e+00> : vector<16xf32>
    %330 = vector.multi_reduction <add>, %325, %cst_149 [1] : vector<16x32xf32> to vector<16xf32>
    %331 = vector.shape_cast %330 : vector<16xf32> to vector<16x1xf32>
    %cst_150 = arith.constant 3.200000e+01 : f32
    %332 = vector.broadcast %cst_150 : f32 to vector<16x1xf32>
    %333 = arith.divf %331, %332 : vector<16x1xf32>
    %334 = vector.broadcast %333 : vector<16x1xf32> to vector<16x32xf32>
    %335 = arith.subf %325, %334 : vector<16x32xf32>
    %336 = arith.mulf %335, %335 : vector<16x32xf32>
    %cst_151 = arith.constant dense<0.000000e+00> : vector<16xf32>
    %337 = vector.multi_reduction <add>, %336, %cst_151 [1] : vector<16x32xf32> to vector<16xf32>
    %338 = vector.shape_cast %337 : vector<16xf32> to vector<16x1xf32>
    %cst_152 = arith.constant 3.200000e+01 : f32
    %339 = vector.broadcast %cst_152 : f32 to vector<16x1xf32>
    %340 = arith.divf %338, %339 : vector<16x1xf32>
    %341 = vector.broadcast %333 : vector<16x1xf32> to vector<16x32xf32>
    %342 = arith.subf %325, %341 : vector<16x32xf32>
    %cst_153 = arith.constant 9.99999974E-6 : f32
    %343 = vector.broadcast %cst_153 : f32 to vector<16x1xf32>
    %344 = arith.addf %340, %343 : vector<16x1xf32>
    %345 = math.rsqrt %344 : vector<16x1xf32>
    %346 = vector.broadcast %345 : vector<16x1xf32> to vector<16x32xf32>
    %347 = arith.mulf %342, %346 : vector<16x32xf32>
    %348 = vector.broadcast %327 : vector<1x32xf32> to vector<16x32xf32>
    %349 = arith.mulf %347, %348 : vector<16x32xf32>
    %350 = vector.broadcast %329 : vector<1x32xf32> to vector<16x32xf32>
    %351 = arith.addf %349, %350 : vector<16x32xf32>
    %352 = vector.shape_cast %351 : vector<16x32xf32> to vector<2x8x32xf32>
    %cst_154 = arith.constant dense<0.000000e+00> : vector<2x32xf32>
    %353 = vector.multi_reduction <add>, %352, %cst_154 [1] : vector<2x8x32xf32> to vector<2x32xf32>
    %cst_155 = arith.constant 8.000000e+00 : f32
    %354 = vector.broadcast %cst_155 : f32 to vector<2x32xf32>
    %355 = arith.divf %353, %354 : vector<2x32xf32>
    %c0_156 = arith.constant 0 : index
    %c0_157 = arith.constant 0 : index
    %356 = vector.load %arg14[%c0_156, %c0_157] : memref<32x5xf32, #tpu.memory_space<vmem>>, vector<32x5xf32>
    %cst_158 = arith.constant dense<0.000000e+00> : vector<2x5xf32>
    %357 = tpu.matmul %355, %356, %cst_158 {dimension_numbers = #tpu.dot_dimension_numbers<[1], [0], [0], [1], [0, 0, 1, 1], [], []>} : vector<2x32xf32>, vector<32x5xf32>, vector<2x5xf32> -> vector<2x5xf32>
    %c0_159 = arith.constant 0 : index
    %c0_160 = arith.constant 0 : index
    %358 = vector.load %arg15[%c0_159, %c0_160] : memref<1x5xf32, #tpu.memory_space<vmem>>, vector<1x5xf32>
    %359 = vector.broadcast %358 : vector<1x5xf32> to vector<2x5xf32>
    %360 = arith.addf %357, %359 : vector<2x5xf32>
    %c0_161 = arith.constant 0 : index
    %c0_162 = arith.constant 0 : index
    %361 = vector.load %arg16[%c0_161, %c0_162] : memref<2x5xf32, #tpu.memory_space<vmem>>, vector<2x5xf32>
    tpu.vector_store %arg16[%c0_161, %c0_162], %360 {strides = array<i32>} : memref<2x5xf32, #tpu.memory_space<vmem>>, vector<2x5xf32>,
    return
  }
}

</mosaic_0001>

<bundles_post_ra>
// kernel: transformer_forward.1
= control target key start
LH: loop header
LB: loop body
LE: loop exit
PB: predicated region body
PF: predicated region fallthrough
CT: control target
= control target key end

     0   :  { %s5747_s0 = inlined_call_operand.vmem [shape: f32[2,8,32], index: 0, kind: input, shape index: {}]   ;;  %s5748_s1 = inlined_call_operand.vmem [shape: f32[8,32], index: 1, kind: input, shape index: {}]   ;;  %s5749_s2 = inlined_call_operand.vmem [shape: f32[2,32,96], index: 2, kind: input, shape index: {}]   ;;  %s5750_s3 = inlined_call_operand.vmem [shape: f32[2,1,96], index: 3, kind: input, shape index: {}]   ;;  %s5751_s4 = inlined_call_operand.vmem [shape: f32[2,32,32], index: 4, kind: input, shape index: {}]   ;;  %s5752_s5 = inlined_call_operand.vmem [shape: f32[2,1,32], index: 5, kind: input, shape index: {}]   ;;  %s5753_s6 = inlined_call_operand.vmem [shape: f32[2,1,32], index: 6, kind: input, shape index: {}]   ;;  %s5754_s7 = inlined_call_operand.vmem [shape: f32[2,1,32], index: 7, kind: input, shape index: {}]   ;;  %s5755_s8 = inlined_call_operand.vmem [shape: f32[2,32,128], index: 8, kind: input, shape index: {}]   ;;  %s5756_s9 = inlined_call_operand.vmem [shape: f32[2,1,128], index: 9, kind: input, shape index: {}]   ;;  %s5757_s10 = inlined_call_operand.vmem [shape: f32[2,128,32], index: 10, kind: input, shape index: {}]   ;;  %s5758_s11 = inlined_call_operand.vmem [shape: f32[2,1,32], index: 11, kind: input, shape index: {}]   ;;  %s5759_s12 = inlined_call_operand.vmem [shape: f32[2,1,32], index: 12, kind: input, shape index: {}]   ;;  %s5760_s13 = inlined_call_operand.vmem [shape: f32[2,1,32], index: 13, kind: input, shape index: {}]   ;;  %s5761_s14 = inlined_call_operand.vmem [shape: f32[32,5], index: 14, kind: input, shape index: {}]   ;;  %s5762_s15 = inlined_call_operand.vmem [shape: f32[1,5], index: 15, kind: input, shape index: {}]   ;;  %s5763_s16 = inlined_call_operand.hbm [shape: f32[2,5], index: 16, kind: output, shape index: {}]  }
   0x1   :  { %5771 = sst [smem:[#allocation5_spill]] %s5747_s0 }
   0x2   :  { %v62_v0 = vld [vmem:[%s5749_s2 + $0x18] sm:$0xff]  ;;  %v61_v1 = vld [vmem:[%s5749_s2 + $0x10] sm:$0xff]  ;;  %v60_v2 = vld [vmem:[%s5749_s2 + $0x8] sm:$0xff]  ;;  %s5772_s29 = sld [smem:[#allocation5_spill]]  ;;  %vm70_vm0 = vcmask 261120  }
   0x3   :  { %4575 = vmatprep.subr.mxu0 %v62_v0  ;;  %v56_v5 = vld [vmem:[%s5748_s1] sm:$0xff] }
   0x4   :  { %4576 = vmatpush3.msra.mxu0 %v62_v0 }
   0x8   :  { %v54_v3 = vld [vmem:[%s5772_s29] sm:$0xff]  ;;  %v55_v4 = vld [vmem:[%s5772_s29 + $0x8] sm:$0xff] }
   0x9   :  { %21 = vsyncpa [#allocation3], 0  ;;  %4577 = vmatprep.subr.mxu0 %v61_v1  ;;  %v5141_v6 = vadd.f32 %v56_v5, %v54_v3  ;;  %v59_v7 = vld [vmem:[%s5749_s2] sm:$0xff]  ;;  %v5146_v8 = vadd.f32 %v56_v5, %v55_v4  ;;  %v5024_v9 = vmov 0.0   ;;  %vm5025_vm1 = vmmov 0   ;;  %s5026_s22 = smov 96  }
   0xa   :  { %4578 = vmatpush3.msra.mxu0 %v61_v1  ;;  %4601 = vmatprep.subr.mxu1 %v5024_v9  ;;  %v4296_v11 = vld [vmem:[%s5750_s3] ss:$0 sm:$0xff]  ;;  %vm159_vm2 = vcmask 64512   ;;  %s5027_s23 = smov 64   ;;  %s5028_s24 = smov 88   ;;  %vm4206_vm3 = vcmask 1041409  }
   0xb   :  { %4579 = vmatprep.subr.mxu0 %v60_v2  ;;  %4583 = vmatprep.mubr.msk.f32.mxu0 %vm70_vm0, %v5141_v6  ;;  %s5029_s25 = smov 120   ;;  %s5030_s26 = smov 56   ;;  %vm4280_vm4 = vcmask 33792  }
   0xc   :  { %4580 = vmatpush3.msra.mxu0 %v60_v2  ;;  %4603 = vmatprep.mubr.msk.f32.mxu1 %vm5025_vm1, %v5024_v9  ;;  %s5031_s27 = smov 112   ;;  %s5032_s28 = smov 80  }
   0xd   :  { %4581 = vmatprep.subr.mxu0 %v59_v7  ;;  %s5033_s18 = smov 48   ;;  %s5769_s19 = smov 72  }
   0xe   :  { %4582 = vmatpush3.msra.mxu0 %v59_v7  ;;  %v152_v7 = vld [vmem:[%s5751_s4] sm:$0xff]  ;;  %s5767_s20 = smov 104   ;;  %s5765_s29 = smov 40  }
   0xf   :  { %4584 = vmatmul.mubr.msk.f32.vlgmr.msra.gmra.mxu0 %vm70_vm0, %v5146_v8  ;;  %4586 = vmatprep.subr.mxu0 %v5024_v9 }
  0x10   :  { %4588 = vmatprep.mubr.msk.f32.mxu0 %vm5025_vm1, %v5024_v9 }
  0xcf   :  { %v4585_v10 = vpop.f32.mrf.mxu0 }
  0xd0   :  { %v5165_v14 = vadd.f32 %v4585_v10, %v4296_v11 }
  0xd1   :  { %v143_v12 = vpop.f32.mrf.mxu0 }
  0xd2   :  { %v5161_v13 = vadd.f32 %v4296_v11, %v143_v12 }
  0xd4   :  { %157 = vrot.lane.b32.xlu0 %v5161_v13, %s5026_s22 }
  0xd8   :  { %235 = vrot.lane.b32.xlu0 %v5165_v14, %s5026_s22 }
 0x146   :  { %v158_v15 = vpop.permute.xlu0 %157 }
 0x147   :  { %4587 = vmatpush3.xpose.msk.msra.mxu0 %vm159_vm2, %v158_v15 }
 0x148   :  { %4591 = vmatprep.subr.mxu0 %v5024_v9 }
 0x14a   :  { %4589 = vmatmul.mubr.msk.f32.vlgmr.msra.gmra.mxu0 %vm159_vm2, %v5161_v13  ;;  %v236_v16 = vpop.permute.xlu0 %235 }
 0x14b   :  { %4592 = vmatpush3.xpose.msk.msra.mxu0 %vm159_vm2, %v236_v16  ;;  %4593 = vmatprep.mubr.msk.f32.mxu0 %vm5025_vm1, %v5024_v9 }
 0x14c   :  { %4596 = vmatprep.subr.mxu0 %v5024_v9 }
 0x14e   :  { %4594 = vmatmul.mubr.msk.f32.vlgmr.msra.gmra.mxu0 %vm159_vm2, %v5165_v14 }
 0x14f   :  { %4598 = vmatprep.mubr.msk.f32.mxu0 %vm5025_vm1, %v5024_v9 }
 0x20a   :  { %v230_v17 = vpop.f32.mrf.mxu0 }
 0x20b   :  { %v311_v18 = vmul.f32 0.35355338, %v230_v17 }
 0x20c   :  { %v4590_v19 = vpop.f32.mrf.mxu0 }
 0x20d   :  { %v313_v20 = vsel %vm159_vm2, %v311_v18, -inf }
 0x20e   :  { %314 = vmax.xlane.f32.xlu1 %v313_v20  ;;  %v307_v21 = vpop.f32.mrf.mxu0 }
 0x20f   :  { %v312_v22 = vmul.f32 0.35355338, %v307_v21 }
 0x210   :  { %v4595_v23 = vpop.f32.mrf.mxu0 }
 0x211   :  { %v316_v24 = vsel %vm159_vm2, %v312_v22, -inf }
 0x212   :  { %317 = vmax.xlane.f32.xlu1 %v316_v24 }
 0x223   :  { %335 = vrot.lane.b32.xlu1 %v5161_v13, %s5027_s23 }
 0x227   :  { %411 = vrot.lane.b32.xlu1 %v5165_v14, %s5027_s23 }
 0x22b   :  { %489 = vrot.lane.b32.xlu1 %v5161_v13, %s5028_s24 }
 0x22f   :  { %567 = vrot.lane.b32.xlu1 %v5165_v14, %s5028_s24 }
 0x297   :  { %v315_v25 = vpop.xlane.xlu1 %314 }
 0x298   :  { %v319_v26 = vsub.f32 %v311_v18, %v315_v25 }
 0x29a   :  { %v321_v27 = vmul.f32 1.442695, %v319_v26 }
 0x29b   :  { %v318_v28 = vpop.xlane.xlu1 %317 }
 0x29c   :  { %4914 = vpow2.f32 %v321_v27  ;;  %v320_v29 = vsub.f32 %v312_v22, %v318_v28  ;;  %v153_v22 = vld [vmem:[%s5751_s4 + $0x8] sm:$0xff] }
 0x29e   :  { %v323_v30 = vmul.f32 1.442695, %v320_v29 }
 0x29f   :  { %v336_v31 = vpop.permute.xlu1 %335 }
 0x2a0   :  { %4916 = vpow2.f32 %v323_v30  ;;  %4597 = vmatpush3.msra.mxu0 %v336_v31 }
 0x2a1   :  { %4606 = vmatprep.subr.mxu0 %v5024_v9 }
 0x2a3   :  { %v412_v32 = vpop.permute.xlu1 %411 }
 0x2a4   :  { %4602 = vmatpush3.msra.mxu1 %v412_v32 }
 0x2a5   :  { %4611 = vmatprep.subr.mxu1 %v5024_v9 }
 0x2a7   :  { %v490_v37 = vpop.permute.xlu1 %489 }
 0x2a9   :  { %v4915_v33 = vpop.eup %4914 }
 0x2aa   :  { %v325_v34 = vsel %vm159_vm2, %v4915_v33, 0.0 }
 0x2ab   :  { %326 = vadd.xlane.f32.xlu0 %v325_v34  ;;  %v568_v38 = vpop.permute.xlu1 %567 }
 0x2ad   :  { %v4917_v35 = vpop.eup %4916 }
 0x2ae   :  { %v328_v36 = vsel %vm159_vm2, %v4917_v35, 0.0 }
 0x2af   :  { %329 = vadd.xlane.f32.xlu1 %v328_v36 }
 0x2c0   :  { %565 = vrot.lane.b32.xlu1 %v5165_v14, %s5029_s25 }
 0x2c1   :  { %487 = vrot.lane.b32.xlu0 %v5161_v13, %s5029_s25 }
 0x334   :  { %v327_v39 = vpop.xlane.xlu0 %326 }
 0x335   :  { %4918 = vrcp.f32 %v327_v39 }
 0x338   :  { %v330_v40 = vpop.xlane.xlu1 %329  ;;  %v488_v45 = vpop.permute.xlu0 %487 }
 0x339   :  { %4920 = vrcp.f32 %v330_v40 }
 0x33c   :  { %v566_v46 = vpop.permute.xlu1 %565 }
 0x342   :  { %v4919_v41 = vpop.eup %4918 }
 0x343   :  { %v333_v42 = vmul.f32 %v4919_v41, %v4915_v33 }
 0x345   :  { %4599 = vmatmul.mubr.msk.f32.vlgmr.msra.gmra.mxu0 %vm159_vm2, %v333_v42 }
 0x346   :  { %v4921_v43 = vpop.eup %4920  ;;  %4607 = vmatpush3.xpose.msk.msra.mxu0 %vm159_vm2, %v490_v37  ;;  %4608 = vmatprep.mubr.msk.f32.mxu0 %vm5025_vm1, %v5024_v9 }
 0x347   :  { %v334_v44 = vmul.f32 %v4921_v43, %v4917_v35  ;;  %4616 = vmatprep.subr.mxu0 %v5024_v9 }
 0x349   :  { %4604 = vmatmul.mubr.msk.f32.vlgmr.msra.gmra.mxu1 %vm159_vm2, %v334_v44  ;;  %4609 = vmatmul.mubr.msk.f32.vlgmr.msra.gmra.mxu0 %vm159_vm2, %v488_v45 }
 0x34a   :  { %4612 = vmatpush3.xpose.msk.msra.mxu1 %vm159_vm2, %v568_v38  ;;  %4613 = vmatprep.mubr.msk.f32.mxu1 %vm5025_vm1, %v5024_v9 }
 0x34b   :  { %4621 = vmatprep.subr.mxu1 %v5024_v9  ;;  %4618 = vmatprep.mubr.msk.f32.mxu0 %vm5025_vm1, %v5024_v9 }
 0x34d   :  { %4614 = vmatmul.mubr.msk.f32.vlgmr.msra.gmra.mxu1 %vm159_vm2, %v566_v46 }
 0x34e   :  { %4623 = vmatprep.mubr.msk.f32.mxu1 %vm5025_vm1, %v5024_v9 }
 0x405   :  { %v407_v47 = vpop.f32.mrf.mxu0 }
 0x407   :  { %v4600_v48 = vpop.f32.mrf.mxu0 }
 0x409   :  { %v483_v49 = vpop.f32.mrf.mxu1  ;;  %v561_v50 = vpop.f32.mrf.mxu0 }
 0x40a   :  { %v643_v51 = vmul.f32 0.35355338, %v561_v50 }
 0x40b   :  { %v4605_v52 = vpop.f32.mrf.mxu1  ;;  %v4610_v53 = vpop.f32.mrf.mxu0 }
 0x40c   :  { %v645_v54 = vsel %vm159_vm2, %v643_v51, -inf }
 0x40d   :  { %v639_v55 = vpop.f32.mrf.mxu1  ;;  %646 = vmax.xlane.f32.xlu1 %v645_v54 }
 0x40e   :  { %v644_v56 = vmul.f32 0.35355338, %v639_v55 }
 0x40f   :  { %v4615_v57 = vpop.f32.mrf.mxu1 }
 0x410   :  { %v648_v58 = vsel %vm159_vm2, %v644_v56, -inf }
 0x411   :  { %649 = vmax.xlane.f32.xlu0 %v648_v58 }
 0x427   :  { %743 = vrot.lane.b32.xlu0 %v5165_v14, %s5030_s26 }
 0x42b   :  { %981 = vrot.lane.b32.xlu0 %v5161_v13, %s5031_s27 }
 0x496   :  { %v647_v59 = vpop.xlane.xlu1 %646 }
 0x497   :  { %v651_v60 = vsub.f32 %v643_v51, %v647_v59 }
 0x499   :  { %v653_v61 = vmul.f32 1.442695, %v651_v60  ;;  %v154_v60 = vld [vmem:[%s5751_s4 + $0x10] sm:$0xff] }
 0x49a   :  { %v650_v62 = vpop.xlane.xlu0 %649 }
 0x49b   :  { %4922 = vpow2.f32 %v653_v61  ;;  %v652_v63 = vsub.f32 %v644_v56, %v650_v62 }
 0x49d   :  { %v655_v0 = vmul.f32 1.442695, %v652_v63 }
 0x49e   :  { %v744_v1 = vpop.permute.xlu0 %743 }
 0x49f   :  { %4924 = vpow2.f32 %v655_v0  ;;  %4622 = vmatpush3.msra.mxu1 %v744_v1 }
 0x4a0   :  { %4631 = vmatprep.subr.mxu1 %v152_v7 }
 0x4a2   :  { %v982_v27 = vpop.permute.xlu0 %981 }
 0x4a8   :  { %v4923_v2 = vpop.eup %4922 }
 0x4a9   :  { %v657_v3 = vsel %vm159_vm2, %v4923_v2, 0.0 }
 0x4aa   :  { %658 = vadd.xlane.f32.xlu1 %v657_v3 }
 0x4ac   :  { %v4925_v4 = vpop.eup %4924 }
 0x4ad   :  { %v660_v5 = vsel %vm159_vm2, %v4925_v4, 0.0 }
 0x4ae   :  { %661 = vadd.xlane.f32.xlu1 %v660_v5 }
 0x4bf   :  { %667 = vrot.lane.b32.xlu1 %v5161_v13, %s5030_s26 }
 0x4c3   :  { %983 = vrot.lane.b32.xlu1 %v5161_v13, %s5032_s28 }
 0x4c7   :  { %1061 = vrot.lane.b32.xlu1 %v5165_v14, %s5032_s28 }
 0x4cb   :  { %1059 = vrot.lane.b32.xlu1 %v5165_v14, %s5031_s27 }
 0x533   :  { %v659_v10 = vpop.xlane.xlu1 %658 }
 0x534   :  { %4926 = vrcp.f32 %v659_v10 }
 0x537   :  { %v662_v11 = vpop.xlane.xlu1 %661 }
 0x538   :  { %4928 = vrcp.f32 %v662_v11 }
 0x53b   :  { %v668_v12 = vpop.permute.xlu1 %667 }
 0x53c   :  { %4617 = vmatpush3.msra.mxu0 %v668_v12 }
 0x53d   :  { %4626 = vmatprep.subr.mxu0 %v153_v22 }
 0x53f   :  { %v984_v17 = vpop.permute.xlu1 %983 }
 0x541   :  { %v4927_v15 = vpop.eup %4926 }
 0x542   :  { %v665_v16 = vmul.f32 %v4927_v15, %v4923_v2 }
 0x543   :  { %v1062_v20 = vpop.permute.xlu1 %1061 }
 0x544   :  { %4619 = vmatmul.mubr.msk.f32.vlgmr.msra.gmra.mxu0 %vm159_vm2, %v665_v16 }
 0x545   :  { %v4929_v18 = vpop.eup %4928  ;;  %4627 = vmatpush3.msra.mxu0 %v153_v22 }
 0x546   :  { %v666_v19 = vmul.f32 %v4929_v18, %v4925_v4  ;;  %4636 = vmatprep.subr.mxu0 %v5024_v9 }
 0x547   :  { %v1060_v21 = vpop.permute.xlu1 %1059 }
 0x548   :  { %4624 = vmatmul.mubr.msk.f32.vlgmr.msra.gmra.mxu1 %vm159_vm2, %v666_v19 }
 0x549   :  { %4633 = vmatprep.mubr.msk.f32.mxu1 %vm159_vm2, %v407_v47  ;;  %4632 = vmatpush3.msra.mxu1 %v152_v7 }
 0x54a   :  { %4641 = vmatprep.subr.mxu1 %v5024_v9 }
 0x54c   :  { %4634 = vmatmul.mubr.msk.f32.vlgmr.msra.gmra.mxu1 %vm159_vm2, %v483_v49 }
 0x54d   :  { %4642 = vmatpush3.xpose.msk.msra.mxu1 %vm159_vm2, %v1062_v20  ;;  %4643 = vmatprep.mubr.msk.f32.mxu1 %vm5025_vm1, %v5024_v9 }
 0x54e   :  { %4651 = vmatprep.subr.mxu1 %v5024_v9 }
 0x550   :  { %4644 = vmatmul.mubr.msk.f32.vlgmr.msra.gmra.mxu1 %vm159_vm2, %v1060_v21 }
 0x551   :  { %4653 = vmatprep.mubr.msk.f32.mxu1 %vm5025_vm1, %v5024_v9 }
 0x604   :  { %v739_v23 = vpop.f32.mrf.mxu0 }
 0x605   :  { %4628 = vmatprep.mubr.msk.f32.mxu0 %vm159_vm2, %v739_v23 }
 0x606   :  { %v4620_v24 = vpop.f32.mrf.mxu0 }
 0x608   :  { %v815_v25 = vpop.f32.mrf.mxu1 }
 0x609   :  { %4629 = vmatmul.mubr.msk.f32.vlgmr.msra.gmra.mxu0 %vm159_vm2, %v815_v25 }
 0x60a   :  { %4637 = vmatpush3.xpose.msk.msra.mxu0 %vm159_vm2, %v984_v17  ;;  %v4625_v26 = vpop.f32.mrf.mxu1  ;;  %4638 = vmatprep.mubr.msk.f32.mxu0 %vm5025_vm1, %v5024_v9 }
 0x60b   :  { %4646 = vmatprep.subr.mxu0 %v5024_v9 }
 0x60c   :  { %v5256_v28 = vpop.f32.mrf.mxu1 }
 0x60d   :  { %4639 = vmatmul.mubr.msk.f32.vlgmr.msra.gmra.mxu0 %vm159_vm2, %v982_v27 }
 0x60e   :  { %v5259_v29 = vpop.f32.mrf.mxu1  ;;  %4648 = vmatprep.mubr.msk.f32.mxu0 %vm5025_vm1, %v5024_v9 }
 0x610   :  { %v1133_v30 = vpop.f32.mrf.mxu1 }
 0x611   :  { %v1138_v31 = vmul.f32 0.35355338, %v1133_v30 }
 0x612   :  { %v4645_v32 = vpop.f32.mrf.mxu1 }
 0x613   :  { %v1142_v33 = vsel %vm159_vm2, %v1138_v31, -inf }
 0x614   :  { %1143 = vmax.xlane.f32.xlu1 %v1142_v33 }
 0x625   :  { %1161 = vrot.lane.b32.xlu1 %v5161_v13, %s5033_s18 }
 0x629   :  { %1398 = vrot.lane.b32.xlu1 %v5161_v13, %s5769_s19 }
 0x62d   :  { %1476 = vrot.lane.b32.xlu1 %v5165_v14, %s5769_s19 }
 0x631   :  { %1474 = vrot.lane.b32.xlu1 %v5165_v14, %s5767_s20 }
 0x69d   :  { %v1144_v34 = vpop.xlane.xlu1 %1143 }
 0x69e   :  { %v1146_v36 = vsub.f32 %v1138_v31, %v1144_v34 }
 0x6a0   :  { %v1149_v37 = vmul.f32 1.442695, %v1146_v36 }
 0x6a1   :  { %v1162_v35 = vpop.permute.xlu1 %1161 }
 0x6a2   :  { %4647 = vmatpush3.msra.mxu0 %v1162_v35  ;;  %4930 = vpow2.f32 %v1149_v37 }
 0x6a3   :  { %4656 = vmatprep.subr.mxu0 %v154_v60 }
 0x6a5   :  { %v1399_v56 = vpop.permute.xlu1 %1398 }
 0x6a9   :  { %v1477_v3 = vpop.permute.xlu1 %1476 }
 0x6ad   :  { %v1475_v7 = vpop.permute.xlu1 %1474 }
 0x6af   :  { %v4931_v44 = vpop.eup %4930 }
 0x6b0   :  { %v1154_v45 = vsel %vm159_vm2, %v4931_v44, 0.0 }
 0x6c9   :  { %v5272_v38 = vpop.f32.mrf.mxu0 }
 0x6ca   :  { %v978_v17 = vadd.f32 %v5256_v28, %v5272_v38 }
 0x6cb   :  { %v5274_v39 = vpop.f32.mrf.mxu0 }
 0x6cc   :  { %v973_v19 = vadd.f32 %v5259_v29, %v5274_v39 }
 0x6cd   :  { %v1055_v40 = vpop.f32.mrf.mxu0 }
 0x6ce   :  { %v1137_v41 = vmul.f32 0.35355338, %v1055_v40 }
 0x6cf   :  { %v4640_v42 = vpop.f32.mrf.mxu0 }
 0x6d0   :  { %v1139_v43 = vsel %vm159_vm2, %v1137_v41, -inf }
 0x6d1   :  { %1140 = vmax.xlane.f32.xlu0 %v1139_v43 }
 0x6d5   :  { %1155 = vadd.xlane.f32.xlu0 %v1154_v45 }
 0x75a   :  { %v1141_v46 = vpop.xlane.xlu0 %1140 }
 0x75b   :  { %v1145_v47 = vsub.f32 %v1137_v41, %v1141_v46 }
 0x75d   :  { %v1147_v48 = vmul.f32 1.442695, %v1145_v47 }
 0x75e   :  { %v1156_v51 = vpop.xlane.xlu0 %1155 }
 0x75f   :  { %4932 = vpow2.f32 %v1147_v48 }
 0x760   :  { %4934 = vrcp.f32 %v1156_v51 }
 0x76c   :  { %v4933_v49 = vpop.eup %4932 }
 0x76d   :  { %v1151_v50 = vsel %vm159_vm2, %v4933_v49, 0.0  ;;  %v4935_v53 = vpop.eup %4934 }
 0x76e   :  { %1152 = vadd.xlane.f32.xlu0 %v1151_v50  ;;  %v1160_v55 = vmul.f32 %v4935_v53, %v4931_v44  ;;  %v4331_v44 = vld [vmem:[%s5752_s5] ss:$0 sm:$0xff] }
 0x784   :  { %1237 = vrot.lane.b32.xlu0 %v5165_v14, %s5033_s18 }
 0x788   :  { %1396 = vrot.lane.b32.xlu0 %v5161_v13, %s5767_s20 }
 0x7f7   :  { %v1153_v52 = vpop.xlane.xlu0 %1152 }
 0x7f8   :  { %4936 = vrcp.f32 %v1153_v52 }
 0x7fb   :  { %v1238_v54 = vpop.permute.xlu0 %1237 }
 0x7fc   :  { %4652 = vmatpush3.msra.mxu1 %v1238_v54 }
 0x7fd   :  { %4654 = vmatmul.mubr.msk.f32.vlgmr.msra.gmra.mxu1 %vm159_vm2, %v1160_v55  ;;  %4661 = vmatprep.subr.mxu1 %v5024_v9 }
 0x7fe   :  { %4662 = vmatpush3.xpose.msk.msra.mxu1 %vm159_vm2, %v1399_v56  ;;  %4663 = vmatprep.mubr.msk.f32.mxu1 %vm5025_vm1, %v5024_v9 }
 0x7ff   :  { %v1397_v57 = vpop.permute.xlu0 %1396  ;;  %4671 = vmatprep.subr.mxu1 %v5024_v9 }
 0x801   :  { %4664 = vmatmul.mubr.msk.f32.vlgmr.msra.gmra.mxu1 %vm159_vm2, %v1397_v57 }
 0x802   :  { %4673 = vmatprep.mubr.msk.f32.mxu1 %vm5025_vm1, %v5024_v9 }
 0x805   :  { %v4937_v58 = vpop.eup %4936 }
 0x806   :  { %v1159_v59 = vmul.f32 %v4937_v58, %v4933_v49 }
 0x808   :  { %4649 = vmatmul.mubr.msk.f32.vlgmr.msra.gmra.mxu0 %vm159_vm2, %v1159_v59 }
 0x809   :  { %4657 = vmatpush3.msra.mxu0 %v154_v60 }
 0x80a   :  { %4666 = vmatprep.subr.mxu0 %v5024_v9 }
 0x8bd   :  { %v1309_v61 = vpop.f32.mrf.mxu1 }
 0x8bf   :  { %v4655_v62 = vpop.f32.mrf.mxu1 }
 0x8c1   :  { %v1470_v63 = vpop.f32.mrf.mxu1 }
 0x8c2   :  { %v1552_v0 = vmul.f32 0.35355338, %v1470_v63  ;;  %v1869_v63 = vld [vmem:[%s5755_s8 + $0x10] sm:$0xff] }
 0x8c3   :  { %v4665_v1 = vpop.f32.mrf.mxu1 }
 0x8c4   :  { %v1554_v2 = vsel %vm159_vm2, %v1552_v0, -inf  ;;  %v1867_v1 = vld [vmem:[%s5755_s8] sm:$0xff] }
 0x8c5   :  { %1555 = vmax.xlane.f32.xlu0 %v1554_v2  ;;  %v1984_v2 = vld [vmem:[%s5757_s10 + $0x78] sm:$0xff] }
 0x8c8   :  { %v1233_v4 = vpop.f32.mrf.mxu0 }
 0x8c9   :  { %4658 = vmatprep.mubr.msk.f32.mxu0 %vm159_vm2, %v1233_v4  ;;  %v1982_v4 = vld [vmem:[%s5757_s10 + $0x68] sm:$0xff] }
 0x8ca   :  { %v4650_v5 = vpop.f32.mrf.mxu0  ;;  %4659 = vmatmul.mubr.msk.f32.vlgmr.msra.gmra.mxu0 %vm159_vm2, %v1309_v61 }
 0x8cb   :  { %4667 = vmatpush3.xpose.msk.msra.mxu0 %vm159_vm2, %v1477_v3  ;;  %4668 = vmatprep.mubr.msk.f32.mxu0 %vm5025_vm1, %v5024_v9  ;;  %v1983_v3 = vld [vmem:[%s5757_s10 + $0x70] sm:$0xff] }
 0x8cc   :  { %4676 = vmatprep.subr.mxu0 %v5024_v9 }
 0x8ce   :  { %4669 = vmatmul.mubr.msk.f32.vlgmr.msra.gmra.mxu0 %vm159_vm2, %v1475_v7 }
 0x8cf   :  { %4678 = vmatprep.mubr.msk.f32.mxu0 %vm5025_vm1, %v5024_v9 }
 0x94e   :  { %v1556_v10 = vpop.xlane.xlu0 %1555 }
 0x94f   :  { %v1560_v11 = vsub.f32 %v1552_v0, %v1556_v10  ;;  %v1868_v0 = vld [vmem:[%s5755_s8 + $0x8] sm:$0xff] }
 0x951   :  { %v1562_v12 = vmul.f32 1.442695, %v1560_v11 }
 0x953   :  { %4938 = vpow2.f32 %v1562_v12 }
 0x960   :  { %v4939_v15 = vpop.eup %4938 }
 0x961   :  { %v1566_v16 = vsel %vm159_vm2, %v4939_v15, 0.0 }
 0x962   :  { %1567 = vadd.xlane.f32.xlu0 %v1566_v16 }
 0x98a   :  { %v4660_v18 = vpop.f32.mrf.mxu0 }
 0x98b   :  { %v1395_v20 = vadd.f32 %v4660_v18, %v978_v17  ;;  %v4332_v17 = vld [vmem:[%s5753_s6] ss:$0 sm:$0xff] }
 0x98c   :  { %v1385_v21 = vpop.f32.mrf.mxu0 }
 0x98d   :  { %v1394_v22 = vadd.f32 %v1385_v21, %v973_v19 }
 0x98e   :  { %v1548_v23 = vpop.f32.mrf.mxu0 }
 0x98f   :  { %v1553_v24 = vmul.f32 0.35355338, %v1548_v23 }
 0x990   :  { %v4670_v25 = vpop.f32.mrf.mxu0 }
 0x991   :  { %v1557_v26 = vsel %vm159_vm2, %v1553_v24, -inf }
 0x992   :  { %1558 = vmax.xlane.f32.xlu1 %v1557_v26  ;;  %v1981_v26 = vld [vmem:[%s5757_s10 + $0x60] sm:$0xff] }
 0x9a3   :  { %1576 = vrot.lane.b32.xlu1 %v5161_v13, %s5765_s29  ;;  %v155_v13 = vld [vmem:[%s5751_s4 + $0x18] sm:$0xff] }
 0x9eb   :  { %v1568_v27 = vpop.xlane.xlu0 %1567 }
 0x9ec   :  { %4940 = vrcp.f32 %v1568_v27  ;;  %v1980_v27 = vld [vmem:[%s5757_s10 + $0x58] sm:$0xff] }
 0x9f9   :  { %v4941_v30 = vpop.eup %4940 }
 0x9fa   :  { %v1574_v33 = vmul.f32 %v4941_v30, %v4939_v15  ;;  %v1978_v30 = vld [vmem:[%s5757_s10 + $0x48] sm:$0xff] }
 0xa1b   :  { %v1559_v28 = vpop.xlane.xlu1 %1558 }
 0xa1c   :  { %v1561_v31 = vsub.f32 %v1553_v24, %v1559_v28  ;;  %v1979_v28 = vld [vmem:[%s5757_s10 + $0x50] sm:$0xff] }
 0xa1e   :  { %v1564_v32 = vmul.f32 1.442695, %v1561_v31  ;;  %v1977_v31 = vld [vmem:[%s5757_s10 + $0x40] sm:$0xff] }
 0xa1f   :  { %v1577_v29 = vpop.permute.xlu1 %1576 }
 0xa20   :  { %4942 = vpow2.f32 %v1564_v32  ;;  %4672 = vmatpush3.msra.mxu1 %v1577_v29  ;;  %v1976_v32 = vld [vmem:[%s5757_s10 + $0x38] sm:$0xff]  ;;  %v1975_v29 = vld [vmem:[%s5757_s10 + $0x30] sm:$0xff] }
 0xa21   :  { %4674 = vmatmul.mubr.msk.f32.vlgmr.msra.gmra.mxu1 %vm159_vm2, %v1574_v33  ;;  %4681 = vmatprep.subr.mxu1 %v155_v13  ;;  %v1974_v33 = vld [vmem:[%s5757_s10 + $0x28] sm:$0xff] }
 0xa22   :  { %4682 = vmatpush3.msra.mxu1 %v155_v13  ;;  %v1971_v13 = vld [vmem:[%s5757_s10 + $0x10] sm:$0xff] }
 0xa23   :  { %4697 = vmatprep.subr.mxu1 %v1984_v2 }
 0xa2d   :  { %v4943_v34 = vpop.eup %4942 }
 0xa2e   :  { %v1569_v35 = vsel %vm159_vm2, %v4943_v34, 0.0 }
 0xa2f   :  { %1570 = vadd.xlane.f32.xlu0 %v1569_v35  ;;  %v1972_v35 = vld [vmem:[%s5757_s10 + $0x18] sm:$0xff] }
 0xa45   :  { %1652 = vrot.lane.b32.xlu0 %v5165_v14, %s5765_s29 }
 0xab8   :  { %v1571_v36 = vpop.xlane.xlu0 %1570 }
 0xab9   :  { %4944 = vrcp.f32 %v1571_v36  ;;  %v1970_v36 = vld [vmem:[%s5757_s10 + $0x8] sm:$0xff] }
 0xabc   :  { %v1653_v37 = vpop.permute.xlu0 %1652 }
 0xabd   :  { %4677 = vmatpush3.msra.mxu0 %v1653_v37  ;;  %v1969_v37 = vld [vmem:[%s5757_s10] sm:$0xff] }
 0xac6   :  { %v4945_v38 = vpop.eup %4944 }
 0xac7   :  { %v1575_v39 = vmul.f32 %v4945_v38, %v4943_v34  ;;  %v1973_v34 = vld [vmem:[%s5757_s10 + $0x20] sm:$0xff] }
 0xac8   :  { %v4334_v38 = vld [vmem:[%s5756_s9] ss:$0 sm:$0xff] }
 0xac9   :  { %4679 = vmatmul.mubr.msk.f32.vlgmr.msra.gmra.mxu0 %vm159_vm2, %v1575_v39 }
 0xae1   :  { %v1648_v40 = vpop.f32.mrf.mxu1 }
 0xae2   :  { %4683 = vmatprep.mubr.msk.f32.mxu1 %vm159_vm2, %v1648_v40 }
 0xae3   :  { %v4675_v41 = vpop.f32.mrf.mxu1 }
 0xb89   :  { %v1724_v42 = vpop.f32.mrf.mxu0 }
 0xb8a   :  { %4684 = vmatmul.mubr.msk.f32.vlgmr.msra.gmra.mxu1 %vm159_vm2, %v1724_v42 }
 0xb8b   :  { %v4680_v14 = vpop.f32.mrf.mxu0  ;;  %4698 = vmatpush3.msra.mxu1 %v1984_v2 }
 0xb8c   :  { %4699 = vmatprep.subr.mxu1 %v1983_v3 }
 0xb8d   :  { %4700 = vmatpush3.msra.mxu1 %v1983_v3 }
 0xb8e   :  { %4701 = vmatprep.subr.mxu1 %v1982_v4 }
 0xb8f   :  { %4702 = vmatpush3.msra.mxu1 %v1982_v4 }
 0xb90   :  { %4703 = vmatprep.subr.mxu1 %v1981_v26 }
 0xb91   :  { %4704 = vmatpush3.msra.mxu1 %v1981_v26  ;;  %v4339_v26 = vld [vmem:[%s5760_s13] ss:$0 sm:$0xff] }
 0xb92   :  { %4705 = vmatprep.subr.mxu1 %v1980_v27 }
 0xb93   :  { %4706 = vmatpush3.msra.mxu1 %v1980_v27 }
 0xb94   :  { %4707 = vmatprep.subr.mxu1 %v1979_v28 }
 0xb95   :  { %4708 = vmatpush3.msra.mxu1 %v1979_v28 }
 0xb96   :  { %4709 = vmatprep.subr.mxu1 %v1978_v30 }
 0xb97   :  { %4710 = vmatpush3.msra.mxu1 %v1978_v30 }
 0xb98   :  { %4711 = vmatprep.subr.mxu1 %v1977_v31 }
 0xb99   :  { %4712 = vmatpush3.msra.mxu1 %v1977_v31  ;;  %v4345_v31 = vld [vmem:[%s5750_s3 + $0x1] ss:$0 sm:$0xff] }
 0xb9a   :  { %4713 = vmatprep.subr.mxu1 %v1976_v32 }
 0xb9b   :  { %4714 = vmatpush3.msra.mxu1 %v1976_v32 }
 0xb9c   :  { %4715 = vmatprep.subr.mxu1 %v1975_v29 }
 0xb9d   :  { %4716 = vmatpush3.msra.mxu1 %v1975_v29 }
 0xb9e   :  { %4717 = vmatprep.subr.mxu1 %v1974_v33 }
 0xb9f   :  { %4718 = vmatpush3.msra.mxu1 %v1974_v33 }
 0xba0   :  { %4719 = vmatprep.subr.mxu1 %v1973_v34 }
 0xba1   :  { %4720 = vmatpush3.msra.mxu1 %v1973_v34 }
 0xba2   :  { %4721 = vmatprep.subr.mxu1 %v1972_v35 }
 0xba3   :  { %4722 = vmatpush3.msra.mxu1 %v1972_v35 }
 0xba4   :  { %4723 = vmatprep.subr.mxu1 %v1971_v13 }
 0xba5   :  { %4724 = vmatpush3.msra.mxu1 %v1971_v13 }
 0xba6   :  { %4725 = vmatprep.subr.mxu1 %v1970_v36 }
 0xba7   :  { %4726 = vmatpush3.msra.mxu1 %v1970_v36 }
 0xba8   :  { %4727 = vmatprep.subr.mxu1 %v1969_v37 }
 0xba9   :  { %4728 = vmatpush3.msra.mxu1 %v1969_v37 }
 0xbaa   :  { %4768 = vmatprep.subr.mxu1 %v5024_v9 }
 0xc4a   :  { %v4685_v43 = vpop.f32.mrf.mxu1 }
 0xc4b   :  { %v1810_v45 = vadd.f32 %v4685_v43, %v1395_v20 }
 0xc4c   :  { %v1800_v46 = vpop.f32.mrf.mxu1 }
 0xc4d   :  { %v1819_v47 = vadd.f32 %v4331_v44, %v1810_v45  ;;  %v1809_v48 = vadd.f32 %v1800_v46, %v1394_v22  ;;  %v4333_v22 = vld [vmem:[%s5754_s7] ss:$0 sm:$0xff] }
 0xc4f   :  { %v1818_v49 = vadd.f32 %v4331_v44, %v1809_v48  ;;  %v1821_v50 = vadd.f32 %v1819_v47, %v5146_v8 }
 0xc51   :  { %v1827_v51 = vsel %vm70_vm0, %v1821_v50, 0.0  ;;  %v1820_v52 = vadd.f32 %v1818_v49, %v5141_v6  ;;  %v1870_v6 = vld [vmem:[%s5755_s8 + $0x18] sm:$0xff] }
 0xc52   :  { %1828 = vadd.xlane.f32.xlu0 %v1827_v51  ;;  %4686 = vmatprep.subr.mxu0 %v1870_v6 }
 0xc53   :  { %v1824_v53 = vsel %vm70_vm0, %v1820_v52, 0.0  ;;  %4687 = vmatpush3.msra.mxu0 %v1870_v6 }
 0xc54   :  { %1825 = vadd.xlane.f32.xlu1 %v1824_v53  ;;  %4688 = vmatprep.subr.mxu0 %v1869_v63 }
 0xc55   :  { %4689 = vmatpush3.msra.mxu0 %v1869_v63 }
 0xc56   :  { %4690 = vmatprep.subr.mxu0 %v1868_v0 }
 0xc57   :  { %4691 = vmatpush3.msra.mxu0 %v1868_v0 }
 0xc58   :  { %4692 = vmatprep.subr.mxu0 %v1867_v1 }
 0xc59   :  { %4693 = vmatpush3.msra.mxu0 %v1867_v1 }
 0xcdb   :  { %v1829_v54 = vpop.xlane.xlu0 %1828 }
 0xcdc   :  { %v1832_v55 = vmul.f32 0.03125, %v1829_v54 }
 0xcdd   :  { %v1826_v56 = vpop.xlane.xlu1 %1825 }
 0xcde   :  { %v1834_v57 = vsub.f32 %v1821_v50, %v1832_v55  ;;  %v1831_v58 = vmul.f32 0.03125, %v1826_v56 }
 0xce0   :  { %v1833_v59 = vsub.f32 %v1820_v52, %v1831_v58  ;;  %v1836_v60 = vmul.f32 %v1834_v57, %v1834_v57  ;;  %v4337_v52 = vld [vmem:[%s5758_s11] ss:$0 sm:$0xff] }
 0xce2   :  { %v1840_v61 = vsel %vm70_vm0, %v1836_v60, 0.0  ;;  %v1835_v62 = vmul.f32 %v1833_v59, %v1833_v59 }
 0xce3   :  { %1841 = vadd.xlane.f32.xlu0 %v1840_v61 }
 0xce4   :  { %v1837_v8 = vsel %vm70_vm0, %v1835_v62, 0.0 }
 0xce5   :  { %1838 = vadd.xlane.f32.xlu1 %v1837_v8 }
 0xd6c   :  { %v1842_v5 = vpop.xlane.xlu0 %1841 }
 0xd6d   :  { %v1844_v7 = vmul.f32 0.03125, %v1842_v5  ;;  %v4343_v5 = vld [vmem:[%s5749_s2 + $0x38] sm:$0xff] }
 0xd6e   :  { %v1839_v10 = vpop.xlane.xlu1 %1838  ;;  %4732 = vmatprep.subr.mxu0 %v4343_v5 }
 0xd6f   :  { %v1846_v11 = vadd.f32 1e-05, %v1844_v7  ;;  %v1843_v12 = vmul.f32 0.03125, %v1839_v10  ;;  %v4342_v7 = vld [vmem:[%s5749_s2 + $0x30] sm:$0xff]  ;;  %v4341_v10 = vld [vmem:[%s5749_s2 + $0x28] sm:$0xff] }
 0xd71   :  { %4946 = vrsqrt.f32 %v1846_v11  ;;  %v1845_v15 = vadd.f32 1e-05, %v1843_v12  ;;  %v4340_v11 = vld [vmem:[%s5749_s2 + $0x20] sm:$0xff] }
 0xd73   :  { %4948 = vrsqrt.f32 %v1845_v15 }
 0xd7e   :  { %v4947_v16 = vpop.eup %4946 }
 0xd7f   :  { %v1850_v18 = vmul.f32 %v4947_v16, %v1834_v57 }
 0xd80   :  { %v4949_v19 = vpop.eup %4948 }
 0xd81   :  { %v1849_v20 = vmul.f32 %v4949_v19, %v1833_v59  ;;  %v1858_v21 = vmul.f32 %v4332_v17, %v1850_v18 }
 0xd83   :  { %v1857_v23 = vmul.f32 %v4332_v17, %v1849_v20  ;;  %v5363_v25 = vadd.f32 %v4333_v22, %v1858_v21  ;;  %v4338_v21 = vld [vmem:[%s5759_s12] ss:$0 sm:$0xff] }
 0xd85   :  { %v5361_v24 = vadd.f32 %v4333_v22, %v1857_v23 }
 0xd87   :  { %4694 = vmatprep.mubr.msk.f32.mxu0 %vm70_vm0, %v5361_v24 }
 0xd88   :  { %4695 = vmatmul.mubr.msk.f32.vlgmr.msra.gmra.mxu0 %vm70_vm0, %v5363_v25 }
 0xd89   :  { %4733 = vmatpush3.msra.mxu0 %v4343_v5 }
 0xd8a   :  { %4734 = vmatprep.subr.mxu0 %v4342_v7 }
 0xd8b   :  { %4735 = vmatpush3.msra.mxu0 %v4342_v7 }
 0xd8c   :  { %4736 = vmatprep.subr.mxu0 %v4341_v10 }
 0xd8d   :  { %4737 = vmatpush3.msra.mxu0 %v4341_v10 }
 0xd8e   :  { %4738 = vmatprep.subr.mxu0 %v4340_v11 }
 0xd8f   :  { %4739 = vmatpush3.msra.mxu0 %v4340_v11 }
 0xd90   :  { %4743 = vmatprep.subr.mxu0 %v5024_v9 }
 0xe48   :  { %v4696_v39 = vpop.f32.mrf.mxu0 }
 0xe49   :  { %v1956_v40 = vadd.f32 %v4696_v39, %v4334_v38 }
 0xe4a   :  { %v1950_v41 = vpop.f32.mrf.mxu0 }
 0xe4b   :  { %v1962_v42 = vmul.f32 0.70710677, %v1956_v40  ;;  %v1951_v14 = vadd.f32 %v4334_v38, %v1950_v41  ;;  %v1960_v49 = vmul.f32 0.5, %v1956_v40 }
 0xe4d   :  { %4950 = verf.f32 %v1962_v42  ;;  %v1961_v43 = vmul.f32 0.70710677, %v1951_v14  ;;  %v1959_v47 = vmul.f32 0.5, %v1951_v14 }
 0xe4f   :  { %4952 = verf.f32 %v1961_v43 }
 0xe5a   :  { %v4951_v44 = vpop.eup %4950 }
 0xe5b   :  { %v1966_v46 = vadd.f32 1.0, %v4951_v44 }
 0xe5c   :  { %v4953_v45 = vpop.eup %4952 }
 0xe5d   :  { %v1965_v48 = vadd.f32 1.0, %v4953_v45  ;;  %v1968_v51 = vmul.f32 %v1966_v46, %v1960_v49 }
 0xe5f   :  { %v1967_v50 = vmul.f32 %v1965_v48, %v1959_v47 }
 0xe61   :  { %4729 = vmatprep.mubr.f32.mxu1 %v1967_v50 }
 0xe62   :  { %4730 = vmatmul.mubr.f32.vlgmr.msra.gmra.mxu1 %v1968_v51 }
 0xe63   :  { %4770 = vmatprep.mubr.msk.f32.mxu1 %vm5025_vm1, %v5024_v9 }
 0xf22   :  { %v4731_v53 = vpop.f32.mrf.mxu1 }
 0xf23   :  { %v2064_v54 = vadd.f32 %v4731_v53, %v4337_v52 }
 0xf24   :  { %v2058_v55 = vpop.f32.mrf.mxu1 }
 0xf25   :  { %v2059_v56 = vadd.f32 %v4337_v52, %v2058_v55  ;;  %v2068_v57 = vadd.f32 %v2064_v54, %v5363_v25 }
 0xf27   :  { %v2074_v58 = vsel %vm70_vm0, %v2068_v57, 0.0  ;;  %v2067_v59 = vadd.f32 %v2059_v56, %v5361_v24 }
 0xf28   :  { %2075 = vadd.xlane.f32.xlu0 %v2074_v58 }
 0xf29   :  { %v2071_v60 = vsel %vm70_vm0, %v2067_v59, 0.0 }
 0xf2a   :  { %2072 = vadd.xlane.f32.xlu1 %v2071_v60 }
 0xfb1   :  { %v2076_v61 = vpop.xlane.xlu0 %2075 }
 0xfb2   :  { %v2078_v62 = vmul.f32 0.03125, %v2076_v61 }
 0xfb3   :  { %v2073_v8 = vpop.xlane.xlu1 %2072 }
 0xfb4   :  { %v2080_v6 = vsub.f32 %v2068_v57, %v2078_v62  ;;  %v2077_v63 = vmul.f32 0.03125, %v2073_v8 }
 0xfb6   :  { %v2079_v0 = vsub.f32 %v2067_v59, %v2077_v63  ;;  %v2082_v1 = vmul.f32 %v2080_v6, %v2080_v6 }
 0xfb8   :  { %v2086_v2 = vsel %vm70_vm0, %v2082_v1, 0.0  ;;  %v2081_v3 = vmul.f32 %v2079_v0, %v2079_v0 }
 0xfb9   :  { %2087 = vadd.xlane.f32.xlu0 %v2086_v2 }
 0xfba   :  { %v2083_v4 = vsel %vm70_vm0, %v2081_v3, 0.0 }
 0xfbb   :  { %2084 = vadd.xlane.f32.xlu1 %v2083_v4 }
0x1042   :  { %v2088_v12 = vpop.xlane.xlu0 %2087 }
0x1043   :  { %v2090_v15 = vmul.f32 0.03125, %v2088_v12 }
0x1044   :  { %v2085_v16 = vpop.xlane.xlu1 %2084 }
0x1045   :  { %v2092_v17 = vadd.f32 1e-05, %v2090_v15  ;;  %v2089_v18 = vmul.f32 0.03125, %v2085_v16 }
0x1047   :  { %4954 = vrsqrt.f32 %v2092_v17  ;;  %v2091_v19 = vadd.f32 1e-05, %v2089_v18 }
0x1049   :  { %4956 = vrsqrt.f32 %v2091_v19 }
0x1054   :  { %v4955_v20 = vpop.eup %4954 }
0x1055   :  { %v2096_v22 = vmul.f32 %v4955_v20, %v2080_v6 }
0x1056   :  { %v4957_v23 = vpop.eup %4956 }
0x1057   :  { %v2095_v24 = vmul.f32 %v4957_v23, %v2079_v0  ;;  %v2104_v25 = vmul.f32 %v4338_v21, %v2096_v22 }
0x1059   :  { %v2103_v27 = vmul.f32 %v4338_v21, %v2095_v24  ;;  %v5444_v30 = vadd.f32 %v4339_v26, %v2104_v25 }
0x105b   :  { %v5442_v28 = vadd.f32 %v4339_v26, %v2103_v27 }
0x105d   :  { %4740 = vmatprep.mubr.msk.f32.mxu0 %vm70_vm0, %v5442_v28 }
0x105e   :  { %4741 = vmatmul.mubr.msk.f32.vlgmr.msra.gmra.mxu0 %vm70_vm0, %v5444_v30 }
0x105f   :  { %4745 = vmatprep.mubr.msk.f32.mxu0 %vm5025_vm1, %v5024_v9 }
0x111e   :  { %v4742_v32 = vpop.f32.mrf.mxu0 }
0x111f   :  { %v5455_v29 = vadd.f32 %v4742_v32, %v4345_v31 }
0x1120   :  { %v2198_v33 = vpop.f32.mrf.mxu0 }
0x1121   :  { %v5457_v34 = vadd.f32 %v4345_v31, %v2198_v33  ;;  %2290 = vrot.lane.b32.xlu0 %v5455_v29, %s5026_s22 }
0x1123   :  { %2213 = vrot.lane.b32.xlu1 %v5457_v34, %s5026_s22 }
0x1193   :  { %v2291_v13 = vpop.permute.xlu0 %2290 }
0x1195   :  { %v2214_v35 = vpop.permute.xlu1 %2213 }
0x1196   :  { %4744 = vmatpush3.xpose.msk.msra.mxu0 %vm159_vm2, %v2214_v35 }
0x1197   :  { %4748 = vmatprep.subr.mxu0 %v5024_v9 }
0x1199   :  { %4746 = vmatmul.mubr.msk.f32.vlgmr.msra.gmra.mxu0 %vm159_vm2, %v5457_v34 }
0x119a   :  { %4749 = vmatpush3.xpose.msk.msra.mxu0 %vm159_vm2, %v2291_v13  ;;  %4750 = vmatprep.mubr.msk.f32.mxu0 %vm5025_vm1, %v5024_v9  ;;  %v4348_v13 = vld [vmem:[%s5751_s4 + $0x20] sm:$0xff] }
0x119b   :  { %4753 = vmatprep.subr.mxu0 %v5024_v9 }
0x119d   :  { %4751 = vmatmul.mubr.msk.f32.vlgmr.msra.gmra.mxu0 %vm159_vm2, %v5455_v29 }
0x119e   :  { %4755 = vmatprep.mubr.msk.f32.mxu0 %vm5025_vm1, %v5024_v9 }
0x1259   :  { %v2285_v36 = vpop.f32.mrf.mxu0 }
0x125a   :  { %v2366_v37 = vmul.f32 0.35355338, %v2285_v36 }
0x125b   :  { %v4747_v38 = vpop.f32.mrf.mxu0 }
0x125c   :  { %v2368_v39 = vsel %vm159_vm2, %v2366_v37, -inf }
0x125d   :  { %2369 = vmax.xlane.f32.xlu1 %v2368_v39  ;;  %v2362_v40 = vpop.f32.mrf.mxu0 }
0x125e   :  { %v2367_v41 = vmul.f32 0.35355338, %v2362_v40 }
0x125f   :  { %v4752_v42 = vpop.f32.mrf.mxu0 }
0x1260   :  { %v2371_v14 = vsel %vm159_vm2, %v2367_v41, -inf }
0x1261   :  { %2372 = vmax.xlane.f32.xlu0 %v2371_v14 }
0x126e   :  { %2390 = vrot.lane.b32.xlu1 %v5457_v34, %s5027_s23 }
0x12e6   :  { %v2370_v43 = vpop.xlane.xlu1 %2369 }
0x12e7   :  { %v2374_v44 = vsub.f32 %v2366_v37, %v2370_v43 }
0x12e9   :  { %v2376_v45 = vmul.f32 1.442695, %v2374_v44 }
0x12ea   :  { %v2391_v46 = vpop.permute.xlu1 %2390  ;;  %v2373_v47 = vpop.xlane.xlu0 %2372 }
0x12eb   :  { %4958 = vpow2.f32 %v2376_v45  ;;  %v2375_v48 = vsub.f32 %v2367_v41, %v2373_v47  ;;  %4754 = vmatpush3.msra.mxu0 %v2391_v46  ;;  %v4349_v41 = vld [vmem:[%s5751_s4 + $0x28] sm:$0xff] }
0x12ec   :  { %4758 = vmatprep.subr.mxu0 %v5024_v9 }
0x12ed   :  { %v2378_v49 = vmul.f32 1.442695, %v2375_v48 }
0x12ef   :  { %4960 = vpow2.f32 %v2378_v49 }
0x12f8   :  { %v4959_v50 = vpop.eup %4958 }
0x12f9   :  { %v2380_v51 = vsel %vm159_vm2, %v4959_v50, 0.0 }
0x12fa   :  { %2381 = vadd.xlane.f32.xlu1 %v2380_v51 }
0x12fc   :  { %v4961_v52 = vpop.eup %4960 }
0x12fd   :  { %v2383_v53 = vsel %vm159_vm2, %v4961_v52, 0.0 }
0x12fe   :  { %2384 = vadd.xlane.f32.xlu0 %v2383_v53 }
0x130b   :  { %2544 = vrot.lane.b32.xlu1 %v5457_v34, %s5028_s24 }
0x130f   :  { %2622 = vrot.lane.b32.xlu1 %v5455_v29, %s5028_s24  ;;  %s5037_s24 = smov [#allocation2]  }
0x1313   :  { %2620 = vrot.lane.b32.xlu1 %v5455_v29, %s5029_s25 }
0x1314   :  { %2466 = vrot.lane.b32.xlu0 %v5455_v29, %s5027_s23 }
0x1318   :  { %2542 = vrot.lane.b32.xlu0 %v5457_v34, %s5029_s25  ;;  %s5773_s25 = smov 72  }
0x1383   :  { %v2382_v54 = vpop.xlane.xlu1 %2381 }
0x1384   :  { %4962 = vrcp.f32 %v2382_v54 }
0x1387   :  { %v2545_v55 = vpop.permute.xlu1 %2544  ;;  %v2385_v56 = vpop.xlane.xlu0 %2384 }
0x1388   :  { %4964 = vrcp.f32 %v2385_v56 }
0x138b   :  { %v2623_v57 = vpop.permute.xlu1 %2622  ;;  %v2467_v61 = vpop.permute.xlu0 %2466 }
0x138c   :  { %4769 = vmatpush3.xpose.msk.msra.mxu1 %vm159_vm2, %v2623_v57 }
0x138d   :  { %4778 = vmatprep.subr.mxu1 %v5024_v9 }
0x138f   :  { %v2621_v58 = vpop.permute.xlu1 %2620  ;;  %v2543_v6 = vpop.permute.xlu0 %2542 }
0x1390   :  { %4771 = vmatmul.mubr.msk.f32.vlgmr.msra.gmra.mxu1 %vm159_vm2, %v2621_v58 }
0x1391   :  { %v4963_v59 = vpop.eup %4962  ;;  %4780 = vmatprep.mubr.msk.f32.mxu1 %vm5025_vm1, %v5024_v9 }
0x1392   :  { %v2388_v60 = vmul.f32 %v4963_v59, %v4959_v50 }
0x1394   :  { %4756 = vmatmul.mubr.msk.f32.vlgmr.msra.gmra.mxu0 %vm159_vm2, %v2388_v60 }
0x1395   :  { %v4965_v62 = vpop.eup %4964  ;;  %4759 = vmatpush3.msra.mxu0 %v2467_v61  ;;  %4760 = vmatprep.mubr.msk.f32.mxu0 %vm5025_vm1, %v5024_v9 }
0x1396   :  { %4763 = vmatprep.subr.mxu0 %v5024_v9  ;;  %v2389_v8 = vmul.f32 %v4965_v62, %v4961_v52 }
0x1398   :  { %4761 = vmatmul.mubr.msk.f32.vlgmr.msra.gmra.mxu0 %vm159_vm2, %v2389_v8 }
0x1399   :  { %4764 = vmatpush3.xpose.msk.msra.mxu0 %vm159_vm2, %v2545_v55  ;;  %4765 = vmatprep.mubr.msk.f32.mxu0 %vm5025_vm1, %v5024_v9 }
0x139a   :  { %4773 = vmatprep.subr.mxu0 %v5024_v9 }
0x139c   :  { %4766 = vmatmul.mubr.msk.f32.vlgmr.msra.gmra.mxu0 %vm159_vm2, %v2543_v6 }
0x139d   :  { %4775 = vmatprep.mubr.msk.f32.mxu0 %vm5025_vm1, %v5024_v9 }
0x1450   :  { %v2694_v63 = vpop.f32.mrf.mxu1 }
0x1451   :  { %v2699_v0 = vmul.f32 0.35355338, %v2694_v63 }
0x1452   :  { %v4772_v1 = vpop.f32.mrf.mxu1 }
0x1453   :  { %v2703_v2 = vsel %vm159_vm2, %v2699_v0, -inf }
0x1454   :  { %2704 = vmax.xlane.f32.xlu1 %v2703_v2  ;;  %v2462_v3 = vpop.f32.mrf.mxu0 }
0x1456   :  { %v4757_v4 = vpop.f32.mrf.mxu0 }
0x1458   :  { %v2538_v5 = vpop.f32.mrf.mxu0 }
0x145a   :  { %v4762_v7 = vpop.f32.mrf.mxu0 }
0x145c   :  { %v2616_v10 = vpop.f32.mrf.mxu0 }
0x145d   :  { %v2698_v11 = vmul.f32 0.35355338, %v2616_v10 }
0x145e   :  { %v4767_v12 = vpop.f32.mrf.mxu0 }
0x145f   :  { %v2700_v15 = vsel %vm159_vm2, %v2698_v11, -inf }
0x1460   :  { %2701 = vmax.xlane.f32.xlu0 %v2700_v15 }
0x1465   :  { %2722 = vrot.lane.b32.xlu1 %v5457_v34, %s5030_s26 }
0x1469   :  { %3038 = vrot.lane.b32.xlu1 %v5457_v34, %s5032_s28 }
0x146d   :  { %3116 = vrot.lane.b32.xlu1 %v5455_v29, %s5032_s28 }
0x1471   :  { %3114 = vrot.lane.b32.xlu1 %v5455_v29, %s5031_s27 }
0x14dd   :  { %v2705_v16 = vpop.xlane.xlu1 %2704 }
0x14de   :  { %v2707_v17 = vsub.f32 %v2699_v0, %v2705_v16 }
0x14e0   :  { %v2710_v18 = vmul.f32 1.442695, %v2707_v17  ;;  %v4350_v17 = vld [vmem:[%s5751_s4 + $0x30] sm:$0xff] }
0x14e1   :  { %v2723_v19 = vpop.permute.xlu1 %2722 }
0x14e2   :  { %4966 = vpow2.f32 %v2710_v18  ;;  %4774 = vmatpush3.msra.mxu0 %v2723_v19 }
0x14e3   :  { %4783 = vmatprep.subr.mxu0 %v4349_v41 }
0x14e5   :  { %v3039_v32 = vpop.permute.xlu1 %3038 }
0x14e9   :  { %v2702_v20 = vpop.xlane.xlu0 %2701  ;;  %v3117_v37 = vpop.permute.xlu1 %3116 }
0x14ea   :  { %v2706_v21 = vsub.f32 %v2698_v11, %v2702_v20 }
0x14ec   :  { %v2708_v22 = vmul.f32 1.442695, %v2706_v21 }
0x14ed   :  { %v3115_v38 = vpop.permute.xlu1 %3114 }
0x14ee   :  { %4968 = vpow2.f32 %v2708_v22 }
0x14ef   :  { %v4967_v23 = vpop.eup %4966 }
0x14f0   :  { %v2715_v24 = vsel %vm159_vm2, %v4967_v23, 0.0 }
0x14f1   :  { %2716 = vadd.xlane.f32.xlu0 %v2715_v24 }
0x14fb   :  { %v4969_v25 = vpop.eup %4968 }
0x14fc   :  { %v2712_v26 = vsel %vm159_vm2, %v4969_v25, 0.0 }
0x14fd   :  { %2713 = vadd.xlane.f32.xlu0 %v2712_v26 }
0x1513   :  { %2798 = vrot.lane.b32.xlu0 %v5455_v29, %s5030_s26  ;;  %s5774_s26 = smov 104  }
0x1517   :  { %3036 = vrot.lane.b32.xlu0 %v5457_v34, %s5031_s27 }
0x157a   :  { %v2717_v27 = vpop.xlane.xlu0 %2716 }
0x157b   :  { %4970 = vrcp.f32 %v2717_v27 }
0x1586   :  { %v2714_v31 = vpop.xlane.xlu0 %2713 }
0x1587   :  { %4972 = vrcp.f32 %v2714_v31 }
0x1588   :  { %v4971_v33 = vpop.eup %4970 }
0x1589   :  { %v2721_v35 = vmul.f32 %v4971_v33, %v4967_v23 }
0x158a   :  { %v2799_v36 = vpop.permute.xlu0 %2798 }
0x158b   :  { %4779 = vmatpush3.msra.mxu1 %v2799_v36 }
0x158c   :  { %4781 = vmatmul.mubr.msk.f32.vlgmr.msra.gmra.mxu1 %vm159_vm2, %v2721_v35  ;;  %4788 = vmatprep.subr.mxu1 %v4348_v13 }
0x158d   :  { %4790 = vmatprep.mubr.msk.f32.mxu1 %vm159_vm2, %v2462_v3  ;;  %4789 = vmatpush3.msra.mxu1 %v4348_v13 }
0x158e   :  { %4798 = vmatprep.subr.mxu1 %v5024_v9  ;;  %v3037_v51 = vpop.permute.xlu0 %3036 }
0x1590   :  { %4791 = vmatmul.mubr.msk.f32.vlgmr.msra.gmra.mxu1 %vm159_vm2, %v2538_v5 }
0x1591   :  { %4799 = vmatpush3.xpose.msk.msra.mxu1 %vm159_vm2, %v3117_v37  ;;  %4800 = vmatprep.mubr.msk.f32.mxu1 %vm5025_vm1, %v5024_v9 }
0x1592   :  { %4808 = vmatprep.subr.mxu1 %v5024_v9 }
0x1594   :  { %v4973_v39 = vpop.eup %4972  ;;  %4801 = vmatmul.mubr.msk.f32.vlgmr.msra.gmra.mxu1 %vm159_vm2, %v3115_v38 }
0x1595   :  { %v2720_v40 = vmul.f32 %v4973_v39, %v4969_v25  ;;  %4810 = vmatprep.mubr.msk.f32.mxu1 %vm5025_vm1, %v5024_v9 }
0x1597   :  { %4776 = vmatmul.mubr.msk.f32.vlgmr.msra.gmra.mxu0 %vm159_vm2, %v2720_v40 }
0x1598   :  { %4784 = vmatpush3.msra.mxu0 %v4349_v41 }
0x1599   :  { %4793 = vmatprep.subr.mxu0 %v5024_v9 }
0x164c   :  { %v2870_v42 = vpop.f32.mrf.mxu1 }
0x164e   :  { %v4782_v14 = vpop.f32.mrf.mxu1 }
0x1650   :  { %v5544_v43 = vpop.f32.mrf.mxu1 }
0x1652   :  { %v5546_v44 = vpop.f32.mrf.mxu1 }
0x1654   :  { %v3188_v45 = vpop.f32.mrf.mxu1 }
0x1655   :  { %v3193_v46 = vmul.f32 0.35355338, %v3188_v45 }
0x1656   :  { %v4802_v47 = vpop.f32.mrf.mxu1 }
0x1657   :  { %v2794_v48 = vpop.f32.mrf.mxu0  ;;  %v3197_v49 = vsel %vm159_vm2, %v3193_v46, -inf }
0x1658   :  { %3198 = vmax.xlane.f32.xlu1 %v3197_v49  ;;  %4785 = vmatprep.mubr.msk.f32.mxu0 %vm159_vm2, %v2794_v48 }
0x1659   :  { %v4777_v50 = vpop.f32.mrf.mxu0  ;;  %4786 = vmatmul.mubr.msk.f32.vlgmr.msra.gmra.mxu0 %vm159_vm2, %v2870_v42 }
0x165a   :  { %4794 = vmatpush3.xpose.msk.msra.mxu0 %vm159_vm2, %v3039_v32  ;;  %4795 = vmatprep.mubr.msk.f32.mxu0 %vm5025_vm1, %v5024_v9 }
0x165b   :  { %4803 = vmatprep.subr.mxu0 %v5024_v9 }
0x165d   :  { %4796 = vmatmul.mubr.msk.f32.vlgmr.msra.gmra.mxu0 %vm159_vm2, %v3037_v51 }
0x165e   :  { %4805 = vmatprep.mubr.msk.f32.mxu0 %vm5025_vm1, %v5024_v9 }
0x1669   :  { %3216 = vrot.lane.b32.xlu1 %v5457_v34, %s5033_s18 }
0x166d   :  { %3453 = vrot.lane.b32.xlu1 %v5457_v34, %s5773_s25 }
0x1671   :  { %3531 = vrot.lane.b32.xlu1 %v5455_v29, %s5773_s25  ;;  %s4288_s25 = sshll.u32 %s5037_s24, 4  ;;  %s4289_s25 = int_to_ptr.vmem [resolvable:$true] %s4288_s25 }
0x1672   :  { %p5007_p1 = scmp.lt.s32.totalorder %s4289_s25, %s4289_s25 }
0x1675   :  { %3529 = vrot.lane.b32.xlu1 %v5455_v29, %s5774_s26 }
0x16e1   :  { %v3199_v52 = vpop.xlane.xlu1 %3198 }
0x16e2   :  { %v3201_v54 = vsub.f32 %v3193_v46, %v3199_v52 }
0x16e4   :  { %v3204_v55 = vmul.f32 1.442695, %v3201_v54 }
0x16e5   :  { %v3217_v53 = vpop.permute.xlu1 %3216 }
0x16e6   :  { %4804 = vmatpush3.msra.mxu0 %v3217_v53  ;;  %4974 = vpow2.f32 %v3204_v55 }
0x16e7   :  { %4813 = vmatprep.subr.mxu0 %v4350_v17 }
0x16e9   :  { %v3454_v11 = vpop.permute.xlu1 %3453 }
0x16ed   :  { %v3532_v24 = vpop.permute.xlu1 %3531 }
0x16f1   :  { %v3530_v27 = vpop.permute.xlu1 %3529 }
0x16f3   :  { %v4975_v62 = vpop.eup %4974 }
0x16f4   :  { %v3209_v8 = vsel %vm159_vm2, %v4975_v62, 0.0 }
0x1719   :  { %v5566_v56 = vpop.f32.mrf.mxu0 }
0x171a   :  { %v3033_v36 = vadd.f32 %v5544_v43, %v5566_v56 }
0x171b   :  { %v5568_v57 = vpop.f32.mrf.mxu0 }
0x171c   :  { %v3028_v38 = vadd.f32 %v5546_v44, %v5568_v57 }
0x171d   :  { %v3110_v58 = vpop.f32.mrf.mxu0 }
0x171e   :  { %v3192_v59 = vmul.f32 0.35355338, %v3110_v58 }
0x171f   :  { %v4797_v60 = vpop.f32.mrf.mxu0 }
0x1720   :  { %v3194_v61 = vsel %vm159_vm2, %v3192_v59, -inf }
0x1721   :  { %3195 = vmax.xlane.f32.xlu0 %v3194_v61 }
0x1725   :  { %3210 = vadd.xlane.f32.xlu0 %v3209_v8 }
0x17aa   :  { %v3196_v6 = vpop.xlane.xlu0 %3195 }
0x17ab   :  { %v3200_v63 = vsub.f32 %v3192_v59, %v3196_v6 }
0x17ad   :  { %v3202_v0 = vmul.f32 1.442695, %v3200_v63 }
0x17ae   :  { %v3211_v3 = vpop.xlane.xlu0 %3210 }
0x17af   :  { %4976 = vpow2.f32 %v3202_v0 }
0x17b0   :  { %4978 = vrcp.f32 %v3211_v3 }
0x17bc   :  { %v4977_v1 = vpop.eup %4976 }
0x17bd   :  { %v3206_v2 = vsel %vm159_vm2, %v4977_v1, 0.0  ;;  %v4979_v5 = vpop.eup %4978 }
0x17be   :  { %3207 = vadd.xlane.f32.xlu0 %v3206_v2  ;;  %v3215_v10 = vmul.f32 %v4979_v5, %v4975_v62  ;;  %v4385_v62 = vld [vmem:[%s5752_s5 + $0x1] ss:$0 sm:$0xff] }
0x17d4   :  { %3292 = vrot.lane.b32.xlu0 %v5455_v29, %s5033_s18  ;;  %s5775_s18 = smov 40  }
0x17d8   :  { %3451 = vrot.lane.b32.xlu0 %v5457_v34, %s5774_s26  ;;  %s5002_s26 = scalar_lea.vmem %s4289_s25, 32 }
0x17d9   :  { %p5003_p0 = scmp.ne.s32.totalorder %s4289_s25, %s5002_s26  ;;  %p5008_p2 = scmp.lt.s32.totalorder %s5002_s26, %s5002_s26 }
0x17db   :  { %p5009_p3 = por %p5008_p2, %p5007_p1 }
0x17dd   :  { %p5010_p4 = pnand %p5009_p3, %p5003_p0 }
0x1847   :  { %v3208_v4 = vpop.xlane.xlu0 %3207 }
0x1848   :  { %4980 = vrcp.f32 %v3208_v4 }
0x184b   :  { %v3293_v7 = vpop.permute.xlu0 %3292 }
0x184c   :  { %4809 = vmatpush3.msra.mxu1 %v3293_v7 }
0x184d   :  { %4811 = vmatmul.mubr.msk.f32.vlgmr.msra.gmra.mxu1 %vm159_vm2, %v3215_v10  ;;  %4818 = vmatprep.subr.mxu1 %v5024_v9 }
0x184e   :  { %4819 = vmatpush3.xpose.msk.msra.mxu1 %vm159_vm2, %v3454_v11  ;;  %4820 = vmatprep.mubr.msk.f32.mxu1 %vm5025_vm1, %v5024_v9 }
0x184f   :  { %v3452_v12 = vpop.permute.xlu0 %3451  ;;  %4828 = vmatprep.subr.mxu1 %v5024_v9 }
0x1851   :  { %4821 = vmatmul.mubr.msk.f32.vlgmr.msra.gmra.mxu1 %vm159_vm2, %v3452_v12 }
0x1852   :  { %4830 = vmatprep.mubr.msk.f32.mxu1 %vm5025_vm1, %v5024_v9 }
0x1855   :  { %v4981_v15 = vpop.eup %4980 }
0x1856   :  { %v3214_v16 = vmul.f32 %v4981_v15, %v4977_v1 }
0x1858   :  { %4806 = vmatmul.mubr.msk.f32.vlgmr.msra.gmra.mxu0 %vm159_vm2, %v3214_v16 }
0x1859   :  { %4814 = vmatpush3.msra.mxu0 %v4350_v17 }
0x185a   :  { %4823 = vmatprep.subr.mxu0 %v5024_v9 }
0x190d   :  { %v3364_v18 = vpop.f32.mrf.mxu1 }
0x190f   :  { %v4812_v19 = vpop.f32.mrf.mxu1 }
0x1911   :  { %v3525_v20 = vpop.f32.mrf.mxu1 }
0x1912   :  { %v3607_v21 = vmul.f32 0.35355338, %v3525_v20  ;;  %v4392_v20 = vld [vmem:[%s5755_s8 + $0x30] sm:$0xff] }
0x1913   :  { %v4822_v22 = vpop.f32.mrf.mxu1 }
0x1914   :  { %v3609_v23 = vsel %vm159_vm2, %v3607_v21, -inf  ;;  %v4390_v22 = vld [vmem:[%s5755_s8 + $0x20] sm:$0xff] }
0x1915   :  { %3610 = vmax.xlane.f32.xlu0 %v3609_v23  ;;  %v4413_v23 = vld [vmem:[%s5757_s10 + $0xf8] sm:$0xff] }
0x1918   :  { %v3288_v25 = vpop.f32.mrf.mxu0 }
0x1919   :  { %4815 = vmatprep.mubr.msk.f32.mxu0 %vm159_vm2, %v3288_v25  ;;  %v4411_v25 = vld [vmem:[%s5757_s10 + $0xe8] sm:$0xff] }
0x191a   :  { %v4807_v26 = vpop.f32.mrf.mxu0  ;;  %4816 = vmatmul.mubr.msk.f32.vlgmr.msra.gmra.mxu0 %vm159_vm2, %v3364_v18 }
0x191b   :  { %4824 = vmatpush3.xpose.msk.msra.mxu0 %vm159_vm2, %v3532_v24  ;;  %4825 = vmatprep.mubr.msk.f32.mxu0 %vm5025_vm1, %v5024_v9  ;;  %v4412_v24 = vld [vmem:[%s5757_s10 + $0xf0] sm:$0xff] }
0x191c   :  { %4833 = vmatprep.subr.mxu0 %v5024_v9 }
0x191e   :  { %4826 = vmatmul.mubr.msk.f32.vlgmr.msra.gmra.mxu0 %vm159_vm2, %v3530_v27 }
0x191f   :  { %4835 = vmatprep.mubr.msk.f32.mxu0 %vm5025_vm1, %v5024_v9 }
0x199e   :  { %v3611_v31 = vpop.xlane.xlu0 %3610 }
0x199f   :  { %v3615_v32 = vsub.f32 %v3607_v21, %v3611_v31  ;;  %v4391_v21 = vld [vmem:[%s5755_s8 + $0x28] sm:$0xff] }
0x19a1   :  { %v3617_v33 = vmul.f32 1.442695, %v3615_v32 }
0x19a3   :  { %4982 = vpow2.f32 %v3617_v33 }
0x19b0   :  { %v4983_v35 = vpop.eup %4982 }
0x19b1   :  { %v3621_v13 = vsel %vm159_vm2, %v4983_v35, 0.0 }
0x19b2   :  { %3622 = vadd.xlane.f32.xlu0 %v3621_v13 }
0x19da   :  { %v4817_v37 = vpop.f32.mrf.mxu0 }
0x19db   :  { %v3450_v39 = vadd.f32 %v4817_v37, %v3033_v36  ;;  %v4388_v36 = vld [vmem:[%s5753_s6 + $0x1] ss:$0 sm:$0xff] }
0x19dc   :  { %v3440_v40 = vpop.f32.mrf.mxu0 }
0x19dd   :  { %v3449_v41 = vadd.f32 %v3440_v40, %v3028_v38 }
0x19de   :  { %v3603_v42 = vpop.f32.mrf.mxu0 }
0x19df   :  { %v3608_v14 = vmul.f32 0.35355338, %v3603_v42 }
0x19e0   :  { %v4827_v45 = vpop.f32.mrf.mxu0 }
0x19e1   :  { %v3612_v46 = vsel %vm159_vm2, %v3608_v14, -inf }
0x19e2   :  { %3613 = vmax.xlane.f32.xlu1 %v3612_v46  ;;  %v4410_v46 = vld [vmem:[%s5757_s10 + $0xe0] sm:$0xff] }
0x19f3   :  { %3631 = vrot.lane.b32.xlu1 %v5457_v34, %s5775_s18  ;;  %v4351_v34 = vld [vmem:[%s5751_s4 + $0x38] sm:$0xff] }
0x1a3b   :  { %v3623_v47 = vpop.xlane.xlu0 %3622 }
0x1a3c   :  { %4984 = vrcp.f32 %v3623_v47  ;;  %v4409_v47 = vld [vmem:[%s5757_s10 + $0xd8] sm:$0xff] }
0x1a49   :  { %v4985_v43 = vpop.eup %4984 }
0x1a4a   :  { %v3629_v44 = vmul.f32 %v4985_v43, %v4983_v35  ;;  %v4407_v43 = vld [vmem:[%s5757_s10 + $0xc8] sm:$0xff] }
0x1a6b   :  { %v3614_v48 = vpop.xlane.xlu1 %3613 }
0x1a6c   :  { %v3616_v49 = vsub.f32 %v3608_v14, %v3614_v48  ;;  %v4408_v48 = vld [vmem:[%s5757_s10 + $0xd0] sm:$0xff] }
0x1a6e   :  { %v3619_v50 = vmul.f32 1.442695, %v3616_v49  ;;  %v4406_v49 = vld [vmem:[%s5757_s10 + $0xc0] sm:$0xff] }
0x1a6f   :  { %v3632_v51 = vpop.permute.xlu1 %3631 }
0x1a70   :  { %4986 = vpow2.f32 %v3619_v50  ;;  %4829 = vmatpush3.msra.mxu1 %v3632_v51  ;;  %v4405_v50 = vld [vmem:[%s5757_s10 + $0xb8] sm:$0xff]  ;;  %v4404_v51 = vld [vmem:[%s5757_s10 + $0xb0] sm:$0xff] }
0x1a71   :  { %4831 = vmatmul.mubr.msk.f32.vlgmr.msra.gmra.mxu1 %vm159_vm2, %v3629_v44  ;;  %4838 = vmatprep.subr.mxu1 %v4351_v34  ;;  %v4403_v44 = vld [vmem:[%s5757_s10 + $0xa8] sm:$0xff] }
0x1a72   :  { %4839 = vmatpush3.msra.mxu1 %v4351_v34  ;;  %v4400_v34 = vld [vmem:[%s5757_s10 + $0x90] sm:$0xff] }
0x1a73   :  { %4854 = vmatprep.subr.mxu1 %v4413_v23 }
0x1a7d   :  { %v4987_v52 = vpop.eup %4986 }
0x1a7e   :  { %v3624_v53 = vsel %vm159_vm2, %v4987_v52, 0.0 }
0x1a7f   :  { %3625 = vadd.xlane.f32.xlu0 %v3624_v53  ;;  %v4401_v53 = vld [vmem:[%s5757_s10 + $0x98] sm:$0xff] }
0x1a95   :  { %3707 = vrot.lane.b32.xlu0 %v5455_v29, %s5775_s18 }
0x1b08   :  { %v3626_v54 = vpop.xlane.xlu0 %3625 }
0x1b09   :  { %4988 = vrcp.f32 %v3626_v54  ;;  %v4399_v54 = vld [vmem:[%s5757_s10 + $0x88] sm:$0xff] }
0x1b0c   :  { %v3708_v55 = vpop.permute.xlu0 %3707 }
0x1b0d   :  { %4834 = vmatpush3.msra.mxu0 %v3708_v55  ;;  %v4398_v55 = vld [vmem:[%s5757_s10 + $0x80] sm:$0xff] }
0x1b16   :  { %v4989_v56 = vpop.eup %4988 }
0x1b17   :  { %v3630_v57 = vmul.f32 %v4989_v56, %v4987_v52  ;;  %v4402_v52 = vld [vmem:[%s5757_s10 + $0xa0] sm:$0xff] }
0x1b18   :  { %v4395_v56 = vld [vmem:[%s5756_s9 + $0x1] ss:$0 sm:$0xff] }
0x1b19   :  { %4836 = vmatmul.mubr.msk.f32.vlgmr.msra.gmra.mxu0 %vm159_vm2, %v3630_v57 }
0x1b31   :  { %v3703_v58 = vpop.f32.mrf.mxu1 }
0x1b32   :  { %4840 = vmatprep.mubr.msk.f32.mxu1 %vm159_vm2, %v3703_v58 }
0x1b33   :  { %v4832_v59 = vpop.f32.mrf.mxu1 }
0x1bd9   :  { %v3779_v60 = vpop.f32.mrf.mxu0 }
0x1bda   :  { %4841 = vmatmul.mubr.msk.f32.vlgmr.msra.gmra.mxu1 %vm159_vm2, %v3779_v60 }
0x1bdb   :  { %v4837_v29 = vpop.f32.mrf.mxu0  ;;  %4855 = vmatpush3.msra.mxu1 %v4413_v23 }
0x1bdc   :  { %4856 = vmatprep.subr.mxu1 %v4412_v24 }
0x1bdd   :  { %4857 = vmatpush3.msra.mxu1 %v4412_v24 }
0x1bde   :  { %4858 = vmatprep.subr.mxu1 %v4411_v25 }
0x1bdf   :  { %4859 = vmatpush3.msra.mxu1 %v4411_v25 }
0x1be0   :  { %4860 = vmatprep.subr.mxu1 %v4410_v46 }
0x1be1   :  { %4861 = vmatpush3.msra.mxu1 %v4410_v46 }
0x1be2   :  { %4862 = vmatprep.subr.mxu1 %v4409_v47 }
0x1be3   :  { %4863 = vmatpush3.msra.mxu1 %v4409_v47 }
0x1be4   :  { %4864 = vmatprep.subr.mxu1 %v4408_v48 }
0x1be5   :  { %4865 = vmatpush3.msra.mxu1 %v4408_v48 }
0x1be6   :  { %4866 = vmatprep.subr.mxu1 %v4407_v43 }
0x1be7   :  { %4867 = vmatpush3.msra.mxu1 %v4407_v43 }
0x1be8   :  { %4868 = vmatprep.subr.mxu1 %v4406_v49 }
0x1be9   :  { %4869 = vmatpush3.msra.mxu1 %v4406_v49 }
0x1bea   :  { %4870 = vmatprep.subr.mxu1 %v4405_v50 }
0x1beb   :  { %4871 = vmatpush3.msra.mxu1 %v4405_v50 }
0x1bec   :  { %4872 = vmatprep.subr.mxu1 %v4404_v51 }
0x1bed   :  { %4873 = vmatpush3.msra.mxu1 %v4404_v51 }
0x1bee   :  { %4874 = vmatprep.subr.mxu1 %v4403_v44 }
0x1bef   :  { %4875 = vmatpush3.msra.mxu1 %v4403_v44 }
0x1bf0   :  { %4876 = vmatprep.subr.mxu1 %v4402_v52 }
0x1bf1   :  { %4877 = vmatpush3.msra.mxu1 %v4402_v52 }
0x1bf2   :  { %4878 = vmatprep.subr.mxu1 %v4401_v53 }
0x1bf3   :  { %4879 = vmatpush3.msra.mxu1 %v4401_v53 }
0x1bf4   :  { %4880 = vmatprep.subr.mxu1 %v4400_v34 }
0x1bf5   :  { %4881 = vmatpush3.msra.mxu1 %v4400_v34 }
0x1bf6   :  { %4882 = vmatprep.subr.mxu1 %v4399_v54 }
0x1bf7   :  { %4883 = vmatpush3.msra.mxu1 %v4399_v54 }
0x1bf8   :  { %4884 = vmatprep.subr.mxu1 %v4398_v55 }
0x1bf9   :  { %4885 = vmatpush3.msra.mxu1 %v4398_v55 }
0x1c9a   :  { %v4842_v61 = vpop.f32.mrf.mxu1 }
0x1c9b   :  { %v3865_v8 = vadd.f32 %v4842_v61, %v3450_v39 }
0x1c9c   :  { %v3855_v6 = vpop.f32.mrf.mxu1 }
0x1c9d   :  { %v3875_v63 = vadd.f32 %v4385_v62, %v3865_v8  ;;  %v3864_v0 = vadd.f32 %v3855_v6, %v3449_v41  ;;  %v4389_v41 = vld [vmem:[%s5754_s7 + $0x1] ss:$0 sm:$0xff] }
0x1c9f   :  { %v3874_v1 = vadd.f32 %v4385_v62, %v3864_v0  ;;  %v3877_v2 = vadd.f32 %v3875_v63, %v5444_v30 }
0x1ca1   :  { %v3885_v3 = vsel %vm70_vm0, %v3877_v2, 0.0  ;;  %v3876_v4 = vadd.f32 %v3874_v1, %v5442_v28  ;;  %v4393_v28 = vld [vmem:[%s5755_s8 + $0x38] sm:$0xff] }
0x1ca2   :  { %3886 = vadd.xlane.f32.xlu0 %v3885_v3  ;;  %4843 = vmatprep.subr.mxu0 %v4393_v28 }
0x1ca3   :  { %v3882_v5 = vsel %vm70_vm0, %v3876_v4, 0.0  ;;  %4844 = vmatpush3.msra.mxu0 %v4393_v28 }
0x1ca4   :  { %3883 = vadd.xlane.f32.xlu1 %v3882_v5  ;;  %4845 = vmatprep.subr.mxu0 %v4392_v20 }
0x1ca5   :  { %4846 = vmatpush3.msra.mxu0 %v4392_v20 }
0x1ca6   :  { %4847 = vmatprep.subr.mxu0 %v4391_v21 }
0x1ca7   :  { %4848 = vmatpush3.msra.mxu0 %v4391_v21 }
0x1ca8   :  { %4849 = vmatprep.subr.mxu0 %v4390_v22 }
0x1ca9   :  { %4850 = vmatpush3.msra.mxu0 %v4390_v22 }
0x1caa   :  { %4889 = vmatprep.subr.mxu0 %v5024_v9 }
0x1d2b   :  { %v3887_v7 = vpop.xlane.xlu0 %3886 }
0x1d2c   :  { %v3889_v10 = vmul.f32 0.03125, %v3887_v7 }
0x1d2d   :  { %v3884_v11 = vpop.xlane.xlu1 %3883 }
0x1d2e   :  { %v3891_v12 = vsub.f32 %v3877_v2, %v3889_v10  ;;  %v3888_v15 = vmul.f32 0.03125, %v3884_v11 }
0x1d30   :  { %v3890_v16 = vsub.f32 %v3876_v4, %v3888_v15  ;;  %v3893_v17 = vmul.f32 %v3891_v12, %v3891_v12  ;;  %v4415_v4 = vld [vmem:[%s5758_s11 + $0x1] ss:$0 sm:$0xff] }
0x1d32   :  { %v3897_v18 = vsel %vm70_vm0, %v3893_v17, 0.0  ;;  %v3892_v19 = vmul.f32 %v3890_v16, %v3890_v16 }
0x1d33   :  { %3898 = vadd.xlane.f32.xlu0 %v3897_v18 }
0x1d34   :  { %v3894_v30 = vsel %vm70_vm0, %v3892_v19, 0.0 }
0x1d35   :  { %3895 = vadd.xlane.f32.xlu1 %v3894_v30 }
0x1dbc   :  { %v3899_v26 = vpop.xlane.xlu0 %3898 }
0x1dbd   :  { %v3901_v27 = vmul.f32 0.03125, %v3899_v26  ;;  %v4196_v26 = vld [vmem:[%s5761_s14 + $0x18] sm:$0xff] }
0x1dbe   :  { %v3896_v31 = vpop.xlane.xlu1 %3895 }
0x1dbf   :  { %v3903_v32 = vadd.f32 1e-05, %v3901_v27  ;;  %v3900_v33 = vmul.f32 0.03125, %v3896_v31  ;;  %v4195_v27 = vld [vmem:[%s5761_s14 + $0x10] sm:$0xff]  ;;  %v4194_v31 = vld [vmem:[%s5761_s14 + $0x8] sm:$0xff] }
0x1dc1   :  { %4990 = vrsqrt.f32 %v3903_v32  ;;  %v3902_v35 = vadd.f32 1e-05, %v3900_v33  ;;  %v4193_v32 = vld [vmem:[%s5761_s14] sm:$0xff] }
0x1dc3   :  { %4992 = vrsqrt.f32 %v3902_v35 }
0x1dce   :  { %v4991_v13 = vpop.eup %4990 }
0x1dcf   :  { %v3907_v37 = vmul.f32 %v4991_v13, %v3891_v12 }
0x1dd0   :  { %v4993_v38 = vpop.eup %4992 }
0x1dd1   :  { %v3906_v39 = vmul.f32 %v4993_v38, %v3890_v16  ;;  %v3915_v40 = vmul.f32 %v4388_v36, %v3907_v37 }
0x1dd3   :  { %v3914_v42 = vmul.f32 %v4388_v36, %v3906_v39  ;;  %v5658_v45 = vadd.f32 %v4389_v41, %v3915_v40  ;;  %v4418_v40 = vld [vmem:[%s5759_s12 + $0x1] ss:$0 sm:$0xff] }
0x1dd5   :  { %v5656_v14 = vadd.f32 %v4389_v41, %v3914_v42 }
0x1dd7   :  { %4851 = vmatprep.mubr.msk.f32.mxu0 %vm70_vm0, %v5656_v14 }
0x1dd8   :  { %4852 = vmatmul.mubr.msk.f32.vlgmr.msra.gmra.mxu0 %vm70_vm0, %v5658_v45 }
0x1dd9   :  { %4897 = vmatprep.mubr.msk.f32.mxu0 %vm5025_vm1, %v5024_v9  ;;  %4890 = vmatpush3.msra.mxu0 %v4196_v26 }
0x1dda   :  { %4891 = vmatprep.subr.mxu0 %v5024_v9 }
0x1ddb   :  { %4892 = vmatpush3.msra.mxu0 %v4195_v27 }
0x1ddc   :  { %4893 = vmatprep.subr.mxu0 %v5024_v9 }
0x1ddd   :  { %4894 = vmatpush3.msra.mxu0 %v4194_v31 }
0x1dde   :  { %4895 = vmatprep.subr.mxu0 %v5024_v9  ;;  %v4419_v9 = vld [vmem:[%s5760_s13 + $0x1] ss:$0 sm:$0xff] }
0x1ddf   :  { %4896 = vmatpush3.msra.mxu0 %v4193_v32 }
0x1e98   :  { %v4853_v57 = vpop.f32.mrf.mxu0 }
0x1e99   :  { %v4015_v58 = vadd.f32 %v4853_v57, %v4395_v56 }
0x1e9a   :  { %v4009_v59 = vpop.f32.mrf.mxu0 }
0x1e9b   :  { %v4021_v60 = vmul.f32 0.70710677, %v4015_v58  ;;  %v4010_v29 = vadd.f32 %v4395_v56, %v4009_v59  ;;  %v4019_v1 = vmul.f32 0.5, %v4015_v58 }
0x1e9d   :  { %4994 = verf.f32 %v4021_v60  ;;  %v4020_v61 = vmul.f32 0.70710677, %v4010_v29  ;;  %v4018_v63 = vmul.f32 0.5, %v4010_v29 }
0x1e9f   :  { %4996 = verf.f32 %v4020_v61 }
0x1eaa   :  { %v4995_v62 = vpop.eup %4994 }
0x1eab   :  { %v4025_v6 = vadd.f32 1.0, %v4995_v62  ;;  %v4420_v62 = vld [vmem:[%s5762_s15] ss:$0 sm:$0xff] }
0x1eac   :  { %v4997_v8 = vpop.eup %4996 }
0x1ead   :  { %v4024_v0 = vadd.f32 1.0, %v4997_v8  ;;  %v4027_v3 = vmul.f32 %v4025_v6, %v4019_v1 }
0x1eaf   :  { %v4026_v2 = vmul.f32 %v4024_v0, %v4018_v63 }
0x1eb1   :  { %4886 = vmatprep.mubr.f32.mxu1 %v4026_v2 }
0x1eb2   :  { %4887 = vmatmul.mubr.f32.vlgmr.msra.gmra.mxu1 %v4027_v3 }
0x1f72   :  { %v4888_v5 = vpop.f32.mrf.mxu1 }
0x1f73   :  { %v4125_v7 = vadd.f32 %v4888_v5, %v4415_v4 }
0x1f74   :  { %v4119_v10 = vpop.f32.mrf.mxu1 }
0x1f75   :  { %v4120_v11 = vadd.f32 %v4415_v4, %v4119_v10  ;;  %v4129_v12 = vadd.f32 %v4125_v7, %v5658_v45 }
0x1f77   :  { %v4137_v15 = vsel %vm70_vm0, %v4129_v12, 0.0  ;;  %v4128_v16 = vadd.f32 %v4120_v11, %v5656_v14 }
0x1f78   :  { %4138 = vadd.xlane.f32.xlu0 %v4137_v15 }
0x1f79   :  { %v4134_v17 = vsel %vm70_vm0, %v4128_v16, 0.0 }
0x1f7a   :  { %4135 = vadd.xlane.f32.xlu1 %v4134_v17 }
0x2001   :  { %v4139_v18 = vpop.xlane.xlu0 %4138 }
0x2002   :  { %v4141_v19 = vmul.f32 0.03125, %v4139_v18 }
0x2003   :  { %v4136_v30 = vpop.xlane.xlu1 %4135 }
0x2004   :  { %v4143_v28 = vsub.f32 %v4129_v12, %v4141_v19  ;;  %v4140_v20 = vmul.f32 0.03125, %v4136_v30 }
0x2006   :  { %v4142_v21 = vsub.f32 %v4128_v16, %v4140_v20  ;;  %v4145_v22 = vmul.f32 %v4143_v28, %v4143_v28 }
0x2008   :  { %v4149_v23 = vsel %vm70_vm0, %v4145_v22, 0.0  ;;  %v4144_v24 = vmul.f32 %v4142_v21, %v4142_v21 }
0x2009   :  { %4150 = vadd.xlane.f32.xlu0 %v4149_v23 }
0x200a   :  { %v4146_v25 = vsel %vm70_vm0, %v4144_v24, 0.0 }
0x200b   :  { %4147 = vadd.xlane.f32.xlu1 %v4146_v25 }
0x2092   :  { %v4151_v33 = vpop.xlane.xlu0 %4150 }
0x2093   :  { %v4153_v35 = vmul.f32 0.03125, %v4151_v33 }
0x2094   :  { %v4148_v13 = vpop.xlane.xlu1 %4147 }
0x2095   :  { %v4155_v36 = vadd.f32 1e-05, %v4153_v35  ;;  %v4152_v37 = vmul.f32 0.03125, %v4148_v13 }
0x2097   :  { %4998 = vrsqrt.f32 %v4155_v36  ;;  %v4154_v38 = vadd.f32 1e-05, %v4152_v37 }
0x2099   :  { %5000 = vrsqrt.f32 %v4154_v38 }
0x20a4   :  { %v4999_v39 = vpop.eup %4998 }
0x20a5   :  { %v4159_v41 = vmul.f32 %v4999_v39, %v4143_v28 }
0x20a6   :  { %v5001_v42 = vpop.eup %5000 }
0x20a7   :  { %v4167_v14 = vmul.f32 %v4418_v40, %v4159_v41  ;;  %v4158_v45 = vmul.f32 %v5001_v42, %v4142_v21 }
0x20a9   :  { %v4166_v46 = vmul.f32 %v4418_v40, %v4158_v45  ;;  %v4175_v47 = vadd.f32 %v4419_v9, %v4167_v14 }
0x20ab   :  { %v4174_v48 = vadd.f32 %v4419_v9, %v4166_v46  ;;  %v4183_v43 = vsel %vm70_vm0, %v4175_v47, 0.0 }
0x20ac   :  { %v4184_v49 = vrot.slane %v4183_v43, 4 }
0x20ad   :  { %v4176_v50 = vsel %vm70_vm0, %v4174_v48, 0.0 }
0x20ae   :  { %v4177_v51 = vrot.slane %v4176_v50, 4  ;;  %v4185_v44 = vadd.f32 %v4184_v49, %v4183_v43 }
0x20b0   :  { %v4178_v52 = vadd.f32 %v4177_v51, %v4176_v50  ;;  %v4186_v53 = vrot.slane %v4185_v44, 2 }
0x20b2   :  { %v4179_v34 = vrot.slane %v4178_v52, 2  ;;  %v4187_v54 = vadd.f32 %v4186_v53, %v4185_v44 }
0x20b4   :  { %v4180_v55 = vadd.f32 %v4179_v34, %v4178_v52  ;;  %v4188_v56 = vrot.slane %v4187_v54, 1 }
0x20b6   :  { %v4181_v57 = vrot.slane %v4180_v55, 1  ;;  %v4189_v58 = vadd.f32 %v4188_v56, %v4187_v54 }
0x20b8   :  { %v4182_v59 = vadd.f32 %v4181_v57, %v4180_v55  ;;  %v4192_v29 = vmul.f32 0.125, %v4189_v58 }
0x20ba   :  { %v4191_v60 = vmul.f32 0.125, %v4182_v59 }
0x20bc   :  { %v4207_v61 = vsel %vm4206_vm3, %v4192_v29, %v4191_v60 }
0x20bd   :  { %4898 = vmatmul.mubr.msk.f32.vlgmr.msra.gmra.mxu0 %vm70_vm0, %v4207_v61 }
0x217d   :  { %v4276_v8 = vpop.f32.mrf.mxu0 }
0x217e   :  { %v4277_v6 = vadd.f32 %v4420_v62, %v4276_v8 }
0x217f   :  { %v4899_v63 = vpop.f32.mrf.mxu0 }
0x2180   :  { %4281 = vst.msk [vmem:[#allocation2] sm:$0x3] %vm4280_vm4, %v4277_v6 }
0x2181   :  { %5013 = shalt.err (!%p5010_p4)
}
0x2182   :  { %4291 = dma.vmem_to_hbm [thread:$0]  %s4289_s25, 32, %s5763_s16, [#allocation3]  }
0x2183   :  { %5022 = dma.done.wait [#allocation3], 32  }
0x2184   :  { %5023 = vsyncadd [#allocation3], 4294967264 }
0x2185   :  { %4295 = vsyncpa [#allocation3], 1 }

</bundles_post_ra>
